<compile_context>
chip_gen: v7x
topology: tpu7x:2x2x1
jax: 0.10.0
libtpu: 0.0.40
codegen_flags: <defaults>
</compile_context>

<pallas_src>
import functools
import math

import numpy as np

import jax
import jax.numpy as jnp
from jax import lax
from jax.experimental import pallas as pl
from jax.experimental.pallas import tpu as pltpu


# ---------------------------------------------------------------------------
# Static LeNet-5 geometry
# ---------------------------------------------------------------------------
_H_IN = 32
_W_IN = 32
_KH = 5
_KW = 5
_C1 = 6                      # conv1 output channels
_C2 = 16                     # conv2 output channels
_H1 = _H_IN - _KH + 1        # 28   conv1 output rows
_P1 = _H1 // 2               # 14   pool1 output rows/cols
_H2 = _P1 - _KH + 1          # 10   conv2 output rows
_P2 = _H2 // 2               # 5    pool2 output rows/cols
_FC1_IN = _C2 * _P2 * _P2    # 400
_FC1_OUT = 120
_FC2_OUT = 84

# 128-lane padded chunk widths (performance review: lane-aligned plumbing).
_PAD1 = 128                  # pooled conv1 chunk: 14*6 = 84 useful lanes
_PAD2 = 128                  # pooled conv2 chunk:  5*16 = 80 useful lanes
_FC1_PAD = 128               # fc1 width 120 -> 128
_FC2_PAD = 128               # fc2 width  84 -> 128 (lane-dense output)

_W1_ROWS = _KH * _W_IN * 1   # 160  conv1 Toeplitz K
_W1_COLS = 2 * _PAD1         # 256  (even|odd wo halves, padded)
_W2_ROWS = _KH * _PAD1       # 640  conv2 Toeplitz K (padded row stride)
_W2_COLS = 2 * _PAD2         # 256


def _round_up(n, m):
    return ((n + m - 1) // m) * m


def _cdiv(a, b):
    return -(-a // b)


# ---------------------------------------------------------------------------
# Generation-aware static configuration (tile size, VMEM limit, epilogue dtype)
# ---------------------------------------------------------------------------
def _device_kind():
    try:
        return jax.devices()[0].device_kind.lower()
    except Exception:
        return ""


_KIND = _device_kind()
_IS_V5E = ("v5 lite" in _KIND) or ("v5e" in _KIND) or ("v5litepod" in _KIND)
_IS_V7 = "v7" in _KIND
_HAS_BF16_VPU = ("v6" in _KIND) or _IS_V7

# Max batch tile: VMEM-bound on v5e (f32 epilogues, 16 MiB default scoped),
# larger on v6e/v7x (bf16 epilogues, bigger scoped limit).
_MAX_BATCH_TILE = 128 if _IS_V5E else 256
_EPILOGUE_DTYPE = jnp.bfloat16 if _HAS_BF16_VPU else jnp.float32

try:
    _VMEM_CAP = int(pltpu.get_tpu_info().vmem_capacity_bytes)
except Exception:
    _VMEM_CAP = (64 if _IS_V7 else 128) * 1024 * 1024
_VMEM_LIMIT = int(min(_VMEM_CAP * 3 // 4, 96 * 1024 * 1024))


def _batch_tiling(n):
    """Pick (b_tile, n_pad) so padding waste < one tile and, when there is
    enough work, the grid has >= 2 steps (v7x megacore sharding)."""
    num_tiles = max(1, _cdiv(n, _MAX_BATCH_TILE))
    if num_tiles == 1 and n >= 64:
        num_tiles = 2
    b_tile = _round_up(_cdiv(n, num_tiles), 8)
    return b_tile, b_tile * num_tiles


# ---------------------------------------------------------------------------
# Fused Pallas kernel: conv1+pool1 -> conv2+pool2 -> fc1 -> fc2
# ---------------------------------------------------------------------------
def _smallnet_kernel(x_ref, w1_ref, b1_ref, w2_ref, b2_ref,
                     wf1_ref, bf1_ref, wf2_ref, bf2_ref, o_ref, *, ep_dtype):
    B = x_ref.shape[0]
    bf16 = jnp.bfloat16
    f32 = jnp.float32

    # ---- conv1 (5x5, 1->6) + W-pool as ONE matmul --------------------------
    # Row block q of the LHS = the contiguous 5*32 input lanes for conv1
    # output row ho = q (input rows q..q+4).  Slices are taken from the *ref*
    # (free views) so the whole (B,1024) tile never sits in vregs.
    lhs1 = jnp.concatenate(
        [x_ref[:, q * _W_IN:(q + _KH) * _W_IN].astype(bf16) for q in range(_H1)],
        axis=0)                                                    # (28B, 160)
    y1 = jnp.dot(lhs1, w1_ref[...],
                 preferred_element_type=f32).astype(ep_dtype)      # (28B, 256)
    # W-pool (even/odd output-column halves) + hoisted bias.
    z1 = jnp.maximum(y1[:, :_PAD1], y1[:, _PAD1:]) + b1_ref[...].astype(ep_dtype)
    # H-pool + ReLU; pooled rows laid out along the (128-aligned) lane axis.
    p1 = jnp.concatenate(
        [jnp.maximum(jnp.maximum(z1[(2 * m) * B:(2 * m + 1) * B, :],
                                 z1[(2 * m + 1) * B:(2 * m + 2) * B, :]), 0.0)
         for m in range(_P1)], axis=-1)                            # (B, 14*128)

    # ---- conv2 (5x5, 6->16) + W-pool as ONE matmul --------------------------
    lhs2 = jnp.concatenate(
        [p1[:, r * _PAD1:(r + _KH) * _PAD1] for r in range(_H2)],
        axis=0).astype(bf16)                                       # (10B, 640)
    y2 = jnp.dot(lhs2, w2_ref[...],
                 preferred_element_type=f32).astype(ep_dtype)      # (10B, 256)
    z2 = jnp.maximum(y2[:, :_PAD2], y2[:, _PAD2:]) + b2_ref[...].astype(ep_dtype)
    feat = jnp.concatenate(
        [jnp.maximum(jnp.maximum(z2[(2 * n) * B:(2 * n + 1) * B, :],
                                 z2[(2 * n + 1) * B:(2 * n + 2) * B, :]), 0.0)
         for n in range(_P2)], axis=-1)                            # (B, 5*128)

    # ---- fc1 -> ReLU -> fc2 -> ReLU -----------------------------------------
    h1 = jnp.dot(feat.astype(bf16), wf1_ref[...], preferred_element_type=f32)
    h1 = jnp.maximum(h1 + bf1_ref[...], 0.0).astype(bf16)          # (B, 128)
    h2 = jnp.dot(h1, wf2_ref[...], preferred_element_type=f32)
    h2 = jnp.maximum(h2 + bf2_ref[...], 0.0)                       # (B, 128)
    # self.fc == nn.Threshold(-1e20, 1e20): identity after ReLU -> folded away.
    o_ref[...] = h2.astype(o_ref.dtype)


def smallnet_forward(pressure, packed):
    """pressure: (N, 1, 32, 32) NCHW -> features: (N, 84) float32."""
    n = pressure.shape[0]
    # Lane-dense (N, 1024) view; input dtype is preserved (bf16 producers pass
    # straight through -- the only cast happens on VMEM-resident slices).
    x = pressure.reshape(n, _H_IN * _W_IN)
    if x.dtype not in (jnp.float32, jnp.bfloat16):
        x = x.astype(jnp.float32)

    b_tile, n_pad = _batch_tiling(n)
    if n_pad != n:
        x = jnp.pad(x, ((0, n_pad - n), (0, 0)))
    grid = (n_pad // b_tile,)

    kernel = functools.partial(_smallnet_kernel, ep_dtype=_EPILOGUE_DTYPE)

    out = pl.pallas_call(
        kernel,
        out_shape=jax.ShapeDtypeStruct((n_pad, _FC2_PAD), jnp.float32),
        grid=grid,
        in_specs=[
            pl.BlockSpec((b_tile, _H_IN * _W_IN), lambda t: (t, 0)),
            pl.BlockSpec((_W1_ROWS, _W1_COLS), lambda t: (0, 0)),
            pl.BlockSpec((1, _PAD1), lambda t: (0, 0)),
            pl.BlockSpec((_W2_ROWS, _W2_COLS), lambda t: (0, 0)),
            pl.BlockSpec((1, _PAD2), lambda t: (0, 0)),
            pl.BlockSpec((_P2 * _PAD2, _FC1_PAD), lambda t: (0, 0)),
            pl.BlockSpec((1, _FC1_PAD), lambda t: (0, 0)),
            pl.BlockSpec((_FC1_PAD, _FC2_PAD), lambda t: (0, 0)),
            pl.BlockSpec((1, _FC2_PAD), lambda t: (0, 0)),
        ],
        out_specs=pl.BlockSpec((b_tile, _FC2_PAD), lambda t: (t, 0)),
        compiler_params=pltpu.CompilerParams(
            dimension_semantics=("parallel",),
            vmem_limit_bytes=_VMEM_LIMIT),
    )(x, packed["w1"], packed["b1"], packed["w2"], packed["b2"],
      packed["wfc1"], packed["bfc1"], packed["wfc2"], packed["bfc2"])

    return out[:n, :_FC2_OUT]


# ---------------------------------------------------------------------------
# One-time weight packing (Toeplitz conv weights, 128-lane padding, fc1 perm)
# ---------------------------------------------------------------------------
def _toeplitz_conv_weight(w, w_in, row_stride, col_stride):
    """Pack a (kh, kw, cin, cout) kernel into a banded matmul weight with the
    2x2 W-pool folded into the columns.

    Row index    = i*row_stride + wi*cin + ci   (H offset, input col, in chan)
    Column index = p*col_stride + v*cout + co   with output col wo = 2*v + p,
    so the even/odd-wo halves sit side by side (W-pool = max of the halves).
    Padding lanes (row_stride/col_stride beyond the used extent) stay zero.
    """
    kh, kw, cin, cout = w.shape
    w_out = w_in - kw + 1
    w_half = w_out // 2
    out = np.zeros((kh * row_stride, 2 * col_stride), np.float32)
    for i in range(kh):
        for j in range(kw):
            for p in range(2):
                for v in range(w_half):
                    wi = 2 * v + p + j
                    rows = i * row_stride + wi * cin + np.arange(cin)
                    cols = p * col_stride + v * cout + np.arange(cout)
                    out[np.ix_(rows, cols)] = np.asarray(w[i, j], np.float32)
    return out


def _pad_lane_vec(vec, width):
    out = np.zeros((1, width), np.float32)
    v = np.asarray(vec, np.float32).reshape(-1)
    out[0, :v.shape[0]] = v
    return out


def pack_params(params):
    """Reshape/permute/pad/cast LeNet parameters ONCE into kernel layout."""
    w1 = np.asarray(params["w1"], np.float32)          # (5, 5, 1, 6)  HWIO
    w2 = np.asarray(params["w2"], np.float32)          # (5, 5, 6, 16) HWIO
    W1 = _toeplitz_conv_weight(w1, _W_IN, row_stride=_W_IN * 1, col_stride=_PAD1)
    W2 = _toeplitz_conv_weight(w2, _P1, row_stride=_PAD1, col_stride=_PAD2)

    # fc1: PyTorch flatten order (c*25 + h*5 + w) -> kernel lane (h*128 + w*16 + c),
    # rows beyond the 80 useful lanes per chunk and cols 120..127 stay zero.
    wfc1_src = np.asarray(params["wfc1"], np.float32)            # (400, 120)
    wfc1 = np.zeros((_P2 * _PAD2, _FC1_PAD), np.float32)
    for c in range(_C2):
        for h in range(_P2):
            for w in range(_P2):
                wfc1[h * _PAD2 + w * _C2 + c, :_FC1_OUT] = \
                    wfc1_src[c * (_P2 * _P2) + h * _P2 + w, :]

    wfc2_src = np.asarray(params["wfc2"], np.float32)            # (120, 84)
    wfc2 = np.zeros((_FC1_PAD, _FC2_PAD), np.float32)
    wfc2[:_FC1_OUT, :_FC2_OUT] = wfc2_src

    b1 = _pad_lane_vec(np.tile(np.asarray(params["b1"], np.float32), _P1), _PAD1)
    b2 = _pad_lane_vec(np.tile(np.asarray(params["b2"], np.float32), _P2), _PAD2)
    bfc1 = _pad_lane_vec(params["bfc1"], _FC1_PAD)
    bfc2 = _pad_lane_vec(params["bfc2"], _FC2_PAD)

    return {
        "w1": jnp.asarray(W1, jnp.bfloat16),
        "b1": jnp.asarray(b1, jnp.float32),
        "w2": jnp.asarray(W2, jnp.bfloat16),
        "b2": jnp.asarray(b2, jnp.float32),
        "wfc1": jnp.asarray(wfc1, jnp.bfloat16),
        "bfc1": jnp.asarray(bfc1, jnp.float32),
        "wfc2": jnp.asarray(wfc2, jnp.bfloat16),
        "bfc2": jnp.asarray(bfc2, jnp.float32),
    }


def init_params(key):
    """Deterministic synthetic LeNet parameters (HWIO conv, (in,out) fc)."""
    ks = jax.random.split(key, 8)

    def dense(k, shape, fan_in):
        return jax.random.normal(k, shape, jnp.float32) / math.sqrt(fan_in)

    return {
        "w1": dense(ks[0], (_KH, _KW, 1, _C1), _KH * _KW * 1),
        "b1": dense(ks[1], (_C1,), _KH * _KW * 1),
        "w2": dense(ks[2], (_KH, _KW, _C1, _C2), _KH * _KW * _C1),
        "b2": dense(ks[3], (_C2,), _KH * _KW * _C1),
        "wfc1": dense(ks[4], (_FC1_IN, _FC1_OUT), _FC1_IN),
        "bfc1": dense(ks[5], (_FC1_OUT,), _FC1_IN),
        "wfc2": dense(ks[6], (_FC1_OUT, _FC2_OUT), _FC1_OUT),
        "bfc2": dense(ks[7], (_FC2_OUT,), _FC1_OUT),
        # self.features.fc is replaced by nn.Threshold(-1e20, 1e20): no weights.
    }


# ---------------------------------------------------------------------------
# Pure-JAX reference (for numerical validation of the fused kernel)
# ---------------------------------------------------------------------------
def _reference_forward(pressure, params):
    x = jnp.transpose(pressure.astype(jnp.float32), (0, 2, 3, 1))     # NHWC
    dn = ("NHWC", "HWIO", "NHWC")
    y = lax.conv_general_dilated(x, params["w1"], (1, 1), "VALID",
                                 dimension_numbers=dn)
    y = jnp.maximum(y + params["b1"], 0.0)
    y = lax.reduce_window(y, -jnp.inf, lax.max, (1, 2, 2, 1), (1, 2, 2, 1), "VALID")
    y = lax.conv_general_dilated(y, params["w2"], (1, 1), "VALID",
                                 dimension_numbers=dn)
    y = jnp.maximum(y + params["b2"], 0.0)
    y = lax.reduce_window(y, -jnp.inf, lax.max, (1, 2, 2, 1), (1, 2, 2, 1), "VALID")
    feat = jnp.transpose(y, (0, 3, 1, 2)).reshape(y.shape[0], -1)     # NCHW flatten
    h1 = jnp.maximum(feat @ params["wfc1"] + params["bfc1"], 0.0)
    h2 = jnp.maximum(h1 @ params["wfc2"] + params["bfc2"], 0.0)
    return h2   # Threshold(-1e20, 1e20) is an identity after ReLU.


if __name__ == "__main__":
    key = jax.random.PRNGKey(0)
    pkey, xkey = jax.random.split(key)
    params = init_params(pkey)
    packed = pack_params(params)
    pressure = jax.random.normal(xkey, (2, 1, 32, 32), jnp.float32)   # NCHW

    fwd = jax.jit(smallnet_forward)
    out = jax.block_until_ready(fwd(pressure, packed))

    assert out.shape == (2, _FC2_OUT), out.shape
    assert out.dtype == jnp.float32
    assert bool(jnp.all(jnp.isfinite(out)))

    # Numerical check against a pure-JAX reference (loose tolerance: the
    # kernel uses bf16 MXU operands / bf16 epilogues with f32 accumulation).
    ref = jax.block_until_ready(jax.jit(_reference_forward)(pressure, params))
    max_err = float(jnp.max(jnp.abs(out - ref)))
    assert np.allclose(np.asarray(out), np.asarray(ref), rtol=0.1, atol=0.15), max_err

    print("KERNEL_OK")
</pallas_src>

<mosaic_0001>
module attributes {stable_mosaic.version = 11 : i64} {
  func.func @_smallnet_kernel(%arg0: i32, %arg1: memref<8x1024xf32, #tpu.memory_space<vmem>>, %arg2: memref<160x256xbf16, #tpu.memory_space<vmem>>, %arg3: memref<1x128xf32, #tpu.memory_space<vmem>>, %arg4: memref<640x256xbf16, #tpu.memory_space<vmem>>, %arg5: memref<1x128xf32, #tpu.memory_space<vmem>>, %arg6: memref<640x128xbf16, #tpu.memory_space<vmem>>, %arg7: memref<1x128xf32, #tpu.memory_space<vmem>>, %arg8: memref<128x128xbf16, #tpu.memory_space<vmem>>, %arg9: memref<1x128xf32, #tpu.memory_space<vmem>>, %arg10: memref<8x128xf32, #tpu.memory_space<vmem>>) attributes {dimension_semantics = [#tpu.dimension_semantics<parallel>], iteration_bounds = array<i64: 1>, scalar_prefetch = 0 : i64, scratch_operands = 0 : i64, tpu.core_type = #tpu.core_type<tc>, window_params = [{transform_indices = @transform_0, window_bounds = array<i64: 8, 1024>}, {pipeline_mode = #tpu.pipeline_mode<synchronous>, transform_indices = @transform_1, window_bounds = array<i64: 160, 256>}, {pipeline_mode = #tpu.pipeline_mode<synchronous>, transform_indices = @transform_2, window_bounds = array<i64: 1, 128>}, {pipeline_mode = #tpu.pipeline_mode<synchronous>, transform_indices = @transform_3, window_bounds = array<i64: 640, 256>}, {pipeline_mode = #tpu.pipeline_mode<synchronous>, transform_indices = @transform_4, window_bounds = array<i64: 1, 128>}, {pipeline_mode = #tpu.pipeline_mode<synchronous>, transform_indices = @transform_5, window_bounds = array<i64: 640, 128>}, {pipeline_mode = #tpu.pipeline_mode<synchronous>, transform_indices = @transform_6, window_bounds = array<i64: 1, 128>}, {pipeline_mode = #tpu.pipeline_mode<synchronous>, transform_indices = @transform_7, window_bounds = array<i64: 128, 128>}, {pipeline_mode = #tpu.pipeline_mode<synchronous>, transform_indices = @transform_8, window_bounds = array<i64: 1, 128>}, {transform_indices = @transform_9, window_bounds = array<i64: 8, 128>}]} {
    %c0 = arith.constant 0 : index
    %c0_0 = arith.constant 0 : index
    %0 = vector.load %arg1[%c0, %c0_0] : memref<8x1024xf32, #tpu.memory_space<vmem>>, vector<8x160xf32>
    %1 = arith.truncf %0 : vector<8x160xf32> to vector<8x160xbf16>
    %c0_1 = arith.constant 0 : index
    %c32 = arith.constant 32 : index
    %2 = vector.load %arg1[%c0_1, %c32] : memref<8x1024xf32, #tpu.memory_space<vmem>>, vector<8x160xf32>
    %3 = arith.truncf %2 : vector<8x160xf32> to vector<8x160xbf16>
    %c0_2 = arith.constant 0 : index
    %c64 = arith.constant 64 : index
    %4 = vector.load %arg1[%c0_2, %c64] : memref<8x1024xf32, #tpu.memory_space<vmem>>, vector<8x160xf32>
    %5 = arith.truncf %4 : vector<8x160xf32> to vector<8x160xbf16>
    %c0_3 = arith.constant 0 : index
    %c96 = arith.constant 96 : index
    %6 = vector.load %arg1[%c0_3, %c96] : memref<8x1024xf32, #tpu.memory_space<vmem>>, vector<8x160xf32>
    %7 = arith.truncf %6 : vector<8x160xf32> to vector<8x160xbf16>
    %c0_4 = arith.constant 0 : index
    %c128 = arith.constant 128 : index
    %8 = vector.load %arg1[%c0_4, %c128] : memref<8x1024xf32, #tpu.memory_space<vmem>>, vector<8x160xf32>
    %9 = arith.truncf %8 : vector<8x160xf32> to vector<8x160xbf16>
    %c0_5 = arith.constant 0 : index
    %c160 = arith.constant 160 : index
    %10 = vector.load %arg1[%c0_5, %c160] : memref<8x1024xf32, #tpu.memory_space<vmem>>, vector<8x160xf32>
    %11 = arith.truncf %10 : vector<8x160xf32> to vector<8x160xbf16>
    %c0_6 = arith.constant 0 : index
    %c192 = arith.constant 192 : index
    %12 = vector.load %arg1[%c0_6, %c192] : memref<8x1024xf32, #tpu.memory_space<vmem>>, vector<8x160xf32>
    %13 = arith.truncf %12 : vector<8x160xf32> to vector<8x160xbf16>
    %c0_7 = arith.constant 0 : index
    %c224 = arith.constant 224 : index
    %14 = vector.load %arg1[%c0_7, %c224] : memref<8x1024xf32, #tpu.memory_space<vmem>>, vector<8x160xf32>
    %15 = arith.truncf %14 : vector<8x160xf32> to vector<8x160xbf16>
    %c0_8 = arith.constant 0 : index
    %c256 = arith.constant 256 : index
    %16 = vector.load %arg1[%c0_8, %c256] : memref<8x1024xf32, #tpu.memory_space<vmem>>, vector<8x160xf32>
    %17 = arith.truncf %16 : vector<8x160xf32> to vector<8x160xbf16>
    %c0_9 = arith.constant 0 : index
    %c288 = arith.constant 288 : index
    %18 = vector.load %arg1[%c0_9, %c288] : memref<8x1024xf32, #tpu.memory_space<vmem>>, vector<8x160xf32>
    %19 = arith.truncf %18 : vector<8x160xf32> to vector<8x160xbf16>
    %c0_10 = arith.constant 0 : index
    %c320 = arith.constant 320 : index
    %20 = vector.load %arg1[%c0_10, %c320] : memref<8x1024xf32, #tpu.memory_space<vmem>>, vector<8x160xf32>
    %21 = arith.truncf %20 : vector<8x160xf32> to vector<8x160xbf16>
    %c0_11 = arith.constant 0 : index
    %c352 = arith.constant 352 : index
    %22 = vector.load %arg1[%c0_11, %c352] : memref<8x1024xf32, #tpu.memory_space<vmem>>, vector<8x160xf32>
    %23 = arith.truncf %22 : vector<8x160xf32> to vector<8x160xbf16>
    %c0_12 = arith.constant 0 : index
    %c384 = arith.constant 384 : index
    %24 = vector.load %arg1[%c0_12, %c384] : memref<8x1024xf32, #tpu.memory_space<vmem>>, vector<8x160xf32>
    %25 = arith.truncf %24 : vector<8x160xf32> to vector<8x160xbf16>
    %c0_13 = arith.constant 0 : index
    %c416 = arith.constant 416 : index
    %26 = vector.load %arg1[%c0_13, %c416] : memref<8x1024xf32, #tpu.memory_space<vmem>>, vector<8x160xf32>
    %27 = arith.truncf %26 : vector<8x160xf32> to vector<8x160xbf16>
    %c0_14 = arith.constant 0 : index
    %c448 = arith.constant 448 : index
    %28 = vector.load %arg1[%c0_14, %c448] : memref<8x1024xf32, #tpu.memory_space<vmem>>, vector<8x160xf32>
    %29 = arith.truncf %28 : vector<8x160xf32> to vector<8x160xbf16>
    %c0_15 = arith.constant 0 : index
    %c480 = arith.constant 480 : index
    %30 = vector.load %arg1[%c0_15, %c480] : memref<8x1024xf32, #tpu.memory_space<vmem>>, vector<8x160xf32>
    %31 = arith.truncf %30 : vector<8x160xf32> to vector<8x160xbf16>
    %c0_16 = arith.constant 0 : index
    %c512 = arith.constant 512 : index
    %32 = vector.load %arg1[%c0_16, %c512] : memref<8x1024xf32, #tpu.memory_space<vmem>>, vector<8x160xf32>
    %33 = arith.truncf %32 : vector<8x160xf32> to vector<8x160xbf16>
    %c0_17 = arith.constant 0 : index
    %c544 = arith.constant 544 : index
    %34 = vector.load %arg1[%c0_17, %c544] : memref<8x1024xf32, #tpu.memory_space<vmem>>, vector<8x160xf32>
    %35 = arith.truncf %34 : vector<8x160xf32> to vector<8x160xbf16>
    %c0_18 = arith.constant 0 : index
    %c576 = arith.constant 576 : index
    %36 = vector.load %arg1[%c0_18, %c576] : memref<8x1024xf32, #tpu.memory_space<vmem>>, vector<8x160xf32>
    %37 = arith.truncf %36 : vector<8x160xf32> to vector<8x160xbf16>
    %c0_19 = arith.constant 0 : index
    %c608 = arith.constant 608 : index
    %38 = vector.load %arg1[%c0_19, %c608] : memref<8x1024xf32, #tpu.memory_space<vmem>>, vector<8x160xf32>
    %39 = arith.truncf %38 : vector<8x160xf32> to vector<8x160xbf16>
    %c0_20 = arith.constant 0 : index
    %c640 = arith.constant 640 : index
    %40 = vector.load %arg1[%c0_20, %c640] : memref<8x1024xf32, #tpu.memory_space<vmem>>, vector<8x160xf32>
    %41 = arith.truncf %40 : vector<8x160xf32> to vector<8x160xbf16>
    %c0_21 = arith.constant 0 : index
    %c672 = arith.constant 672 : index
    %42 = vector.load %arg1[%c0_21, %c672] : memref<8x1024xf32, #tpu.memory_space<vmem>>, vector<8x160xf32>
    %43 = arith.truncf %42 : vector<8x160xf32> to vector<8x160xbf16>
    %c0_22 = arith.constant 0 : index
    %c704 = arith.constant 704 : index
    %44 = vector.load %arg1[%c0_22, %c704] : memref<8x1024xf32, #tpu.memory_space<vmem>>, vector<8x160xf32>
    %45 = arith.truncf %44 : vector<8x160xf32> to vector<8x160xbf16>
    %c0_23 = arith.constant 0 : index
    %c736 = arith.constant 736 : index
    %46 = vector.load %arg1[%c0_23, %c736] : memref<8x1024xf32, #tpu.memory_space<vmem>>, vector<8x160xf32>
    %47 = arith.truncf %46 : vector<8x160xf32> to vector<8x160xbf16>
    %c0_24 = arith.constant 0 : index
    %c768 = arith.constant 768 : index
    %48 = vector.load %arg1[%c0_24, %c768] : memref<8x1024xf32, #tpu.memory_space<vmem>>, vector<8x160xf32>
    %49 = arith.truncf %48 : vector<8x160xf32> to vector<8x160xbf16>
    %c0_25 = arith.constant 0 : index
    %c800 = arith.constant 800 : index
    %50 = vector.load %arg1[%c0_25, %c800] : memref<8x1024xf32, #tpu.memory_space<vmem>>, vector<8x160xf32>
    %51 = arith.truncf %50 : vector<8x160xf32> to vector<8x160xbf16>
    %c0_26 = arith.constant 0 : index
    %c832 = arith.constant 832 : index
    %52 = vector.load %arg1[%c0_26, %c832] : memref<8x1024xf32, #tpu.memory_space<vmem>>, vector<8x160xf32>
    %53 = arith.truncf %52 : vector<8x160xf32> to vector<8x160xbf16>
    %c0_27 = arith.constant 0 : index
    %c864 = arith.constant 864 : index
    %54 = vector.load %arg1[%c0_27, %c864] : memref<8x1024xf32, #tpu.memory_space<vmem>>, vector<8x160xf32>
    %55 = arith.truncf %54 : vector<8x160xf32> to vector<8x160xbf16>
    %56 = tpu.concatenate %1, %3, %5, %7, %9, %11, %13, %15, %17, %19, %21, %23, %25, %27, %29, %31 in 0 : vector<8x160xbf16>, vector<8x160xbf16>, vector<8x160xbf16>, vector<8x160xbf16>, vector<8x160xbf16>, vector<8x160xbf16>, vector<8x160xbf16>, vector<8x160xbf16>, vector<8x160xbf16>, vector<8x160xbf16>, vector<8x160xbf16>, vector<8x160xbf16>, vector<8x160xbf16>, vector<8x160xbf16>, vector<8x160xbf16>, vector<8x160xbf16> -> vector<128x160xbf16>
    %57 = tpu.concatenate %33, %35, %37, %39, %41, %43, %45, %47, %49, %51, %53, %55 in 0 : vector<8x160xbf16>, vector<8x160xbf16>, vector<8x160xbf16>, vector<8x160xbf16>, vector<8x160xbf16>, vector<8x160xbf16>, vector<8x160xbf16>, vector<8x160xbf16>, vector<8x160xbf16>, vector<8x160xbf16>, vector<8x160xbf16>, vector<8x160xbf16> -> vector<96x160xbf16>
    %58 = tpu.concatenate %56, %57 in 0 : vector<128x160xbf16>, vector<96x160xbf16> -> vector<224x160xbf16>
    %c0_28 = arith.constant 0 : index
    %c0_29 = arith.constant 0 : index
    %59 = vector.load %arg2[%c0_28, %c0_29] : memref<160x256xbf16, #tpu.memory_space<vmem>>, vector<160x256xbf16>
    %cst = arith.constant dense<0.000000e+00> : vector<224x256xf32>
    %60 = tpu.matmul %58, %59, %cst {dimension_numbers = #tpu.dot_dimension_numbers<[1], [0], [0], [1], [0, 0, 1, 1], [], []>} : vector<224x160xbf16>, vector<160x256xbf16>, vector<224x256xf32> -> vector<224x256xf32>
    %61 = vector.extract_strided_slice %60 {offsets = [0, 0], sizes = [224, 128], strides = [1, 1]} : vector<224x256xf32> to vector<224x128xf32>
    %62 = vector.extract_strided_slice %60 {offsets = [0, 128], sizes = [224, 128], strides = [1, 1]} : vector<224x256xf32> to vector<224x128xf32>
    %63 = arith.maximumf %61, %62 : vector<224x128xf32>
    %c0_30 = arith.constant 0 : index
    %c0_31 = arith.constant 0 : index
    %64 = vector.load %arg3[%c0_30, %c0_31] : memref<1x128xf32, #tpu.memory_space<vmem>>, vector<1x128xf32>
    %65 = vector.broadcast %64 : vector<1x128xf32> to vector<224x128xf32>
    %66 = arith.addf %63, %65 : vector<224x128xf32>
    %67 = vector.extract_strided_slice %66 {offsets = [0, 0], sizes = [8, 128], strides = [1, 1]} : vector<224x128xf32> to vector<8x128xf32>
    %68 = vector.extract_strided_slice %66 {offsets = [8, 0], sizes = [8, 128], strides = [1, 1]} : vector<224x128xf32> to vector<8x128xf32>
    %69 = arith.maximumf %67, %68 : vector<8x128xf32>
    %cst_32 = arith.constant 0.000000e+00 : f32
    %70 = vector.broadcast %cst_32 : f32 to vector<8x128xf32>
    %71 = arith.maximumf %69, %70 : vector<8x128xf32>
    %72 = vector.extract_strided_slice %66 {offsets = [16, 0], sizes = [8, 128], strides = [1, 1]} : vector<224x128xf32> to vector<8x128xf32>
    %73 = vector.extract_strided_slice %66 {offsets = [24, 0], sizes = [8, 128], strides = [1, 1]} : vector<224x128xf32> to vector<8x128xf32>
    %74 = arith.maximumf %72, %73 : vector<8x128xf32>
    %cst_33 = arith.constant 0.000000e+00 : f32
    %75 = vector.broadcast %cst_33 : f32 to vector<8x128xf32>
    %76 = arith.maximumf %74, %75 : vector<8x128xf32>
    %77 = vector.extract_strided_slice %66 {offsets = [32, 0], sizes = [8, 128], strides = [1, 1]} : vector<224x128xf32> to vector<8x128xf32>
    %78 = vector.extract_strided_slice %66 {offsets = [40, 0], sizes = [8, 128], strides = [1, 1]} : vector<224x128xf32> to vector<8x128xf32>
    %79 = arith.maximumf %77, %78 : vector<8x128xf32>
    %cst_34 = arith.constant 0.000000e+00 : f32
    %80 = vector.broadcast %cst_34 : f32 to vector<8x128xf32>
    %81 = arith.maximumf %79, %80 : vector<8x128xf32>
    %82 = vector.extract_strided_slice %66 {offsets = [48, 0], sizes = [8, 128], strides = [1, 1]} : vector<224x128xf32> to vector<8x128xf32>
    %83 = vector.extract_strided_slice %66 {offsets = [56, 0], sizes = [8, 128], strides = [1, 1]} : vector<224x128xf32> to vector<8x128xf32>
    %84 = arith.maximumf %82, %83 : vector<8x128xf32>
    %cst_35 = arith.constant 0.000000e+00 : f32
    %85 = vector.broadcast %cst_35 : f32 to vector<8x128xf32>
    %86 = arith.maximumf %84, %85 : vector<8x128xf32>
    %87 = vector.extract_strided_slice %66 {offsets = [64, 0], sizes = [8, 128], strides = [1, 1]} : vector<224x128xf32> to vector<8x128xf32>
    %88 = vector.extract_strided_slice %66 {offsets = [72, 0], sizes = [8, 128], strides = [1, 1]} : vector<224x128xf32> to vector<8x128xf32>
    %89 = arith.maximumf %87, %88 : vector<8x128xf32>
    %cst_36 = arith.constant 0.000000e+00 : f32
    %90 = vector.broadcast %cst_36 : f32 to vector<8x128xf32>
    %91 = arith.maximumf %89, %90 : vector<8x128xf32>
    %92 = vector.extract_strided_slice %66 {offsets = [80, 0], sizes = [8, 128], strides = [1, 1]} : vector<224x128xf32> to vector<8x128xf32>
    %93 = vector.extract_strided_slice %66 {offsets = [88, 0], sizes = [8, 128], strides = [1, 1]} : vector<224x128xf32> to vector<8x128xf32>
    %94 = arith.maximumf %92, %93 : vector<8x128xf32>
    %cst_37 = arith.constant 0.000000e+00 : f32
    %95 = vector.broadcast %cst_37 : f32 to vector<8x128xf32>
    %96 = arith.maximumf %94, %95 : vector<8x128xf32>
    %97 = vector.extract_strided_slice %66 {offsets = [96, 0], sizes = [8, 128], strides = [1, 1]} : vector<224x128xf32> to vector<8x128xf32>
    %98 = vector.extract_strided_slice %66 {offsets = [104, 0], sizes = [8, 128], strides = [1, 1]} : vector<224x128xf32> to vector<8x128xf32>
    %99 = arith.maximumf %97, %98 : vector<8x128xf32>
    %cst_38 = arith.constant 0.000000e+00 : f32
    %100 = vector.broadcast %cst_38 : f32 to vector<8x128xf32>
    %101 = arith.maximumf %99, %100 : vector<8x128xf32>
    %102 = vector.extract_strided_slice %66 {offsets = [112, 0], sizes = [8, 128], strides = [1, 1]} : vector<224x128xf32> to vector<8x128xf32>
    %103 = vector.extract_strided_slice %66 {offsets = [120, 0], sizes = [8, 128], strides = [1, 1]} : vector<224x128xf32> to vector<8x128xf32>
    %104 = arith.maximumf %102, %103 : vector<8x128xf32>
    %cst_39 = arith.constant 0.000000e+00 : f32
    %105 = vector.broadcast %cst_39 : f32 to vector<8x128xf32>
    %106 = arith.maximumf %104, %105 : vector<8x128xf32>
    %107 = vector.extract_strided_slice %66 {offsets = [128, 0], sizes = [8, 128], strides = [1, 1]} : vector<224x128xf32> to vector<8x128xf32>
    %108 = vector.extract_strided_slice %66 {offsets = [136, 0], sizes = [8, 128], strides = [1, 1]} : vector<224x128xf32> to vector<8x128xf32>
    %109 = arith.maximumf %107, %108 : vector<8x128xf32>
    %cst_40 = arith.constant 0.000000e+00 : f32
    %110 = vector.broadcast %cst_40 : f32 to vector<8x128xf32>
    %111 = arith.maximumf %109, %110 : vector<8x128xf32>
    %112 = vector.extract_strided_slice %66 {offsets = [144, 0], sizes = [8, 128], strides = [1, 1]} : vector<224x128xf32> to vector<8x128xf32>
    %113 = vector.extract_strided_slice %66 {offsets = [152, 0], sizes = [8, 128], strides = [1, 1]} : vector<224x128xf32> to vector<8x128xf32>
    %114 = arith.maximumf %112, %113 : vector<8x128xf32>
    %cst_41 = arith.constant 0.000000e+00 : f32
    %115 = vector.broadcast %cst_41 : f32 to vector<8x128xf32>
    %116 = arith.maximumf %114, %115 : vector<8x128xf32>
    %117 = vector.extract_strided_slice %66 {offsets = [160, 0], sizes = [8, 128], strides = [1, 1]} : vector<224x128xf32> to vector<8x128xf32>
    %118 = vector.extract_strided_slice %66 {offsets = [168, 0], sizes = [8, 128], strides = [1, 1]} : vector<224x128xf32> to vector<8x128xf32>
    %119 = arith.maximumf %117, %118 : vector<8x128xf32>
    %cst_42 = arith.constant 0.000000e+00 : f32
    %120 = vector.broadcast %cst_42 : f32 to vector<8x128xf32>
    %121 = arith.maximumf %119, %120 : vector<8x128xf32>
    %122 = vector.extract_strided_slice %66 {offsets = [176, 0], sizes = [8, 128], strides = [1, 1]} : vector<224x128xf32> to vector<8x128xf32>
    %123 = vector.extract_strided_slice %66 {offsets = [184, 0], sizes = [8, 128], strides = [1, 1]} : vector<224x128xf32> to vector<8x128xf32>
    %124 = arith.maximumf %122, %123 : vector<8x128xf32>
    %cst_43 = arith.constant 0.000000e+00 : f32
    %125 = vector.broadcast %cst_43 : f32 to vector<8x128xf32>
    %126 = arith.maximumf %124, %125 : vector<8x128xf32>
    %127 = vector.extract_strided_slice %66 {offsets = [192, 0], sizes = [8, 128], strides = [1, 1]} : vector<224x128xf32> to vector<8x128xf32>
    %128 = vector.extract_strided_slice %66 {offsets = [200, 0], sizes = [8, 128], strides = [1, 1]} : vector<224x128xf32> to vector<8x128xf32>
    %129 = arith.maximumf %127, %128 : vector<8x128xf32>
    %cst_44 = arith.constant 0.000000e+00 : f32
    %130 = vector.broadcast %cst_44 : f32 to vector<8x128xf32>
    %131 = arith.maximumf %129, %130 : vector<8x128xf32>
    %132 = vector.extract_strided_slice %66 {offsets = [208, 0], sizes = [8, 128], strides = [1, 1]} : vector<224x128xf32> to vector<8x128xf32>
    %133 = vector.extract_strided_slice %66 {offsets = [216, 0], sizes = [8, 128], strides = [1, 1]} : vector<224x128xf32> to vector<8x128xf32>
    %134 = arith.maximumf %132, %133 : vector<8x128xf32>
    %cst_45 = arith.constant 0.000000e+00 : f32
    %135 = vector.broadcast %cst_45 : f32 to vector<8x128xf32>
    %136 = arith.maximumf %134, %135 : vector<8x128xf32>
    %137 = tpu.concatenate %71, %76, %81, %86, %91, %96, %101, %106, %111, %116, %121, %126, %131, %136 in 1 : vector<8x128xf32>, vector<8x128xf32>, vector<8x128xf32>, vector<8x128xf32>, vector<8x128xf32>, vector<8x128xf32>, vector<8x128xf32>, vector<8x128xf32>, vector<8x128xf32>, vector<8x128xf32>, vector<8x128xf32>, vector<8x128xf32>, vector<8x128xf32>, vector<8x128xf32> -> vector<8x1792xf32>
    %138 = vector.extract_strided_slice %137 {offsets = [0, 0], sizes = [8, 640], strides = [1, 1]} : vector<8x1792xf32> to vector<8x640xf32>
    %139 = vector.extract_strided_slice %137 {offsets = [0, 128], sizes = [8, 640], strides = [1, 1]} : vector<8x1792xf32> to vector<8x640xf32>
    %140 = vector.extract_strided_slice %137 {offsets = [0, 256], sizes = [8, 640], strides = [1, 1]} : vector<8x1792xf32> to vector<8x640xf32>
    %141 = vector.extract_strided_slice %137 {offsets = [0, 384], sizes = [8, 640], strides = [1, 1]} : vector<8x1792xf32> to vector<8x640xf32>
    %142 = vector.extract_strided_slice %137 {offsets = [0, 512], sizes = [8, 640], strides = [1, 1]} : vector<8x1792xf32> to vector<8x640xf32>
    %143 = vector.extract_strided_slice %137 {offsets = [0, 640], sizes = [8, 640], strides = [1, 1]} : vector<8x1792xf32> to vector<8x640xf32>
    %144 = vector.extract_strided_slice %137 {offsets = [0, 768], sizes = [8, 640], strides = [1, 1]} : vector<8x1792xf32> to vector<8x640xf32>
    %145 = vector.extract_strided_slice %137 {offsets = [0, 896], sizes = [8, 640], strides = [1, 1]} : vector<8x1792xf32> to vector<8x640xf32>
    %146 = vector.extract_strided_slice %137 {offsets = [0, 1024], sizes = [8, 640], strides = [1, 1]} : vector<8x1792xf32> to vector<8x640xf32>
    %147 = vector.extract_strided_slice %137 {offsets = [0, 1152], sizes = [8, 640], strides = [1, 1]} : vector<8x1792xf32> to vector<8x640xf32>
    %148 = tpu.concatenate %138, %139, %140, %141, %142, %143, %144, %145, %146, %147 in 0 : vector<8x640xf32>, vector<8x640xf32>, vector<8x640xf32>, vector<8x640xf32>, vector<8x640xf32>, vector<8x640xf32>, vector<8x640xf32>, vector<8x640xf32>, vector<8x640xf32>, vector<8x640xf32> -> vector<80x640xf32>
    %149 = arith.truncf %148 : vector<80x640xf32> to vector<80x640xbf16>
    %c0_46 = arith.constant 0 : index
    %c0_47 = arith.constant 0 : index
    %150 = vector.load %arg4[%c0_46, %c0_47] : memref<640x256xbf16, #tpu.memory_space<vmem>>, vector<640x256xbf16>
    %cst_48 = arith.constant dense<0.000000e+00> : vector<80x256xf32>
    %151 = tpu.matmul %149, %150, %cst_48 {dimension_numbers = #tpu.dot_dimension_numbers<[1], [0], [0], [1], [0, 0, 1, 1], [], []>} : vector<80x640xbf16>, vector<640x256xbf16>, vector<80x256xf32> -> vector<80x256xf32>
    %152 = vector.extract_strided_slice %151 {offsets = [0, 0], sizes = [80, 128], strides = [1, 1]} : vector<80x256xf32> to vector<80x128xf32>
    %153 = vector.extract_strided_slice %151 {offsets = [0, 128], sizes = [80, 128], strides = [1, 1]} : vector<80x256xf32> to vector<80x128xf32>
    %154 = arith.maximumf %152, %153 : vector<80x128xf32>
    %c0_49 = arith.constant 0 : index
    %c0_50 = arith.constant 0 : index
    %155 = vector.load %arg5[%c0_49, %c0_50] : memref<1x128xf32, #tpu.memory_space<vmem>>, vector<1x128xf32>
    %156 = vector.broadcast %155 : vector<1x128xf32> to vector<80x128xf32>
    %157 = arith.addf %154, %156 : vector<80x128xf32>
    %158 = vector.extract_strided_slice %157 {offsets = [0, 0], sizes = [8, 128], strides = [1, 1]} : vector<80x128xf32> to vector<8x128xf32>
    %159 = vector.extract_strided_slice %157 {offsets = [8, 0], sizes = [8, 128], strides = [1, 1]} : vector<80x128xf32> to vector<8x128xf32>
    %160 = arith.maximumf %158, %159 : vector<8x128xf32>
    %cst_51 = arith.constant 0.000000e+00 : f32
    %161 = vector.broadcast %cst_51 : f32 to vector<8x128xf32>
    %162 = arith.maximumf %160, %161 : vector<8x128xf32>
    %163 = vector.extract_strided_slice %157 {offsets = [16, 0], sizes = [8, 128], strides = [1, 1]} : vector<80x128xf32> to vector<8x128xf32>
    %164 = vector.extract_strided_slice %157 {offsets = [24, 0], sizes = [8, 128], strides = [1, 1]} : vector<80x128xf32> to vector<8x128xf32>
    %165 = arith.maximumf %163, %164 : vector<8x128xf32>
    %cst_52 = arith.constant 0.000000e+00 : f32
    %166 = vector.broadcast %cst_52 : f32 to vector<8x128xf32>
    %167 = arith.maximumf %165, %166 : vector<8x128xf32>
    %168 = vector.extract_strided_slice %157 {offsets = [32, 0], sizes = [8, 128], strides = [1, 1]} : vector<80x128xf32> to vector<8x128xf32>
    %169 = vector.extract_strided_slice %157 {offsets = [40, 0], sizes = [8, 128], strides = [1, 1]} : vector<80x128xf32> to vector<8x128xf32>
    %170 = arith.maximumf %168, %169 : vector<8x128xf32>
    %cst_53 = arith.constant 0.000000e+00 : f32
    %171 = vector.broadcast %cst_53 : f32 to vector<8x128xf32>
    %172 = arith.maximumf %170, %171 : vector<8x128xf32>
    %173 = vector.extract_strided_slice %157 {offsets = [48, 0], sizes = [8, 128], strides = [1, 1]} : vector<80x128xf32> to vector<8x128xf32>
    %174 = vector.extract_strided_slice %157 {offsets = [56, 0], sizes = [8, 128], strides = [1, 1]} : vector<80x128xf32> to vector<8x128xf32>
    %175 = arith.maximumf %173, %174 : vector<8x128xf32>
    %cst_54 = arith.constant 0.000000e+00 : f32
    %176 = vector.broadcast %cst_54 : f32 to vector<8x128xf32>
    %177 = arith.maximumf %175, %176 : vector<8x128xf32>
    %178 = vector.extract_strided_slice %157 {offsets = [64, 0], sizes = [8, 128], strides = [1, 1]} : vector<80x128xf32> to vector<8x128xf32>
    %179 = vector.extract_strided_slice %157 {offsets = [72, 0], sizes = [8, 128], strides = [1, 1]} : vector<80x128xf32> to vector<8x128xf32>
    %180 = arith.maximumf %178, %179 : vector<8x128xf32>
    %cst_55 = arith.constant 0.000000e+00 : f32
    %181 = vector.broadcast %cst_55 : f32 to vector<8x128xf32>
    %182 = arith.maximumf %180, %181 : vector<8x128xf32>
    %183 = tpu.concatenate %162, %167, %172, %177, %182 in 1 : vector<8x128xf32>, vector<8x128xf32>, vector<8x128xf32>, vector<8x128xf32>, vector<8x128xf32> -> vector<8x640xf32>
    %184 = arith.truncf %183 : vector<8x640xf32> to vector<8x640xbf16>
    %c0_56 = arith.constant 0 : index
    %c0_57 = arith.constant 0 : index
    %185 = vector.load %arg6[%c0_56, %c0_57] : memref<640x128xbf16, #tpu.memory_space<vmem>>, vector<640x128xbf16>
    %cst_58 = arith.constant dense<0.000000e+00> : vector<8x128xf32>
    %186 = tpu.matmul %184, %185, %cst_58 {dimension_numbers = #tpu.dot_dimension_numbers<[1], [0], [0], [1], [0, 0, 1, 1], [], []>} : vector<8x640xbf16>, vector<640x128xbf16>, vector<8x128xf32> -> vector<8x128xf32>
    %c0_59 = arith.constant 0 : index
    %c0_60 = arith.constant 0 : index
    %187 = vector.load %arg7[%c0_59, %c0_60] : memref<1x128xf32, #tpu.memory_space<vmem>>, vector<1x128xf32>
    %188 = vector.broadcast %187 : vector<1x128xf32> to vector<8x128xf32>
    %189 = arith.addf %186, %188 : vector<8x128xf32>
    %cst_61 = arith.constant 0.000000e+00 : f32
    %190 = vector.broadcast %cst_61 : f32 to vector<8x128xf32>
    %191 = arith.maximumf %189, %190 : vector<8x128xf32>
    %192 = arith.truncf %191 : vector<8x128xf32> to vector<8x128xbf16>
    %c0_62 = arith.constant 0 : index
    %c0_63 = arith.constant 0 : index
    %193 = vector.load %arg8[%c0_62, %c0_63] : memref<128x128xbf16, #tpu.memory_space<vmem>>, vector<128x128xbf16>
    %cst_64 = arith.constant dense<0.000000e+00> : vector<8x128xf32>
    %194 = tpu.matmul %192, %193, %cst_64 {dimension_numbers = #tpu.dot_dimension_numbers<[1], [0], [0], [1], [0, 0, 1, 1], [], []>} : vector<8x128xbf16>, vector<128x128xbf16>, vector<8x128xf32> -> vector<8x128xf32>
    %c0_65 = arith.constant 0 : index
    %c0_66 = arith.constant 0 : index
    %195 = vector.load %arg9[%c0_65, %c0_66] : memref<1x128xf32, #tpu.memory_space<vmem>>, vector<1x128xf32>
    %196 = vector.broadcast %195 : vector<1x128xf32> to vector<8x128xf32>
    %197 = arith.addf %194, %196 : vector<8x128xf32>
    %cst_67 = arith.constant 0.000000e+00 : f32
    %198 = vector.broadcast %cst_67 : f32 to vector<8x128xf32>
    %199 = arith.maximumf %197, %198 : vector<8x128xf32>
    %c0_68 = arith.constant 0 : index
    %c0_69 = arith.constant 0 : index
    %200 = vector.load %arg10[%c0_68, %c0_69] : memref<8x128xf32, #tpu.memory_space<vmem>>, vector<8x128xf32>
    tpu.vector_store %arg10[%c0_68, %c0_69], %199 {strides = array<i32>} : memref<8x128xf32, #tpu.memory_space<vmem>>, vector<8x128xf32>,
    return
  }
  func.func @transform_0(%arg0: i32) -> (i32, i32) {
    %c0_i32 = arith.constant 0 : i32
    %c0_i32_0 = arith.constant 0 : i32
    return %arg0, %c0_i32 : i32, i32
  }
  func.func @transform_1(%arg0: i32) -> (i32, i32) {
    %c0_i32 = arith.constant 0 : i32
    %c0_i32_0 = arith.constant 0 : i32
    %c0_i32_1 = arith.constant 0 : i32
    return %c0_i32, %c0_i32_0 : i32, i32
  }
  func.func @transform_2(%arg0: i32) -> (i32, i32) {
    %c0_i32 = arith.constant 0 : i32
    %c0_i32_0 = arith.constant 0 : i32
    %c0_i32_1 = arith.constant 0 : i32
    return %c0_i32, %c0_i32_0 : i32, i32
  }
  func.func @transform_3(%arg0: i32) -> (i32, i32) {
    %c0_i32 = arith.constant 0 : i32
    %c0_i32_0 = arith.constant 0 : i32
    %c0_i32_1 = arith.constant 0 : i32
    return %c0_i32, %c0_i32_0 : i32, i32
  }
  func.func @transform_4(%arg0: i32) -> (i32, i32) {
    %c0_i32 = arith.constant 0 : i32
    %c0_i32_0 = arith.constant 0 : i32
    %c0_i32_1 = arith.constant 0 : i32
    return %c0_i32, %c0_i32_0 : i32, i32
  }
  func.func @transform_5(%arg0: i32) -> (i32, i32) {
    %c0_i32 = arith.constant 0 : i32
    %c0_i32_0 = arith.constant 0 : i32
    %c0_i32_1 = arith.constant 0 : i32
    return %c0_i32, %c0_i32_0 : i32, i32
  }
  func.func @transform_6(%arg0: i32) -> (i32, i32) {
    %c0_i32 = arith.constant 0 : i32
    %c0_i32_0 = arith.constant 0 : i32
    %c0_i32_1 = arith.constant 0 : i32
    return %c0_i32, %c0_i32_0 : i32, i32
  }
  func.func @transform_7(%arg0: i32) -> (i32, i32) {
    %c0_i32 = arith.constant 0 : i32
    %c0_i32_0 = arith.constant 0 : i32
    %c0_i32_1 = arith.constant 0 : i32
    return %c0_i32, %c0_i32_0 : i32, i32
  }
  func.func @transform_8(%arg0: i32) -> (i32, i32) {
    %c0_i32 = arith.constant 0 : i32
    %c0_i32_0 = arith.constant 0 : i32
    %c0_i32_1 = arith.constant 0 : i32
    return %c0_i32, %c0_i32_0 : i32, i32
  }
  func.func @transform_9(%arg0: i32) -> (i32, i32) {
    %c0_i32 = arith.constant 0 : i32
    %c0_i32_0 = arith.constant 0 : i32
    return %arg0, %c0_i32 : i32, i32
  }
}

</mosaic_0001>

<bundles_post_ra>
// kernel: smallnet_forward.1
= control target key start
LH: loop header
LB: loop body
LE: loop exit
PB: predicated region body
PF: predicated region fallthrough
CT: control target
= control target key end

     0   :  { %14 = vsyncpa [#allocation3], 0  ;;  %s3312_s0 = inlined_call_operand.hbm [shape: f32[8,1024], index: 0, kind: input, shape index: {}]   ;;  %s3313_s1 = inlined_call_operand.hbm [shape: bf16[160,256], index: 1, kind: input, shape index: {}]   ;;  %s3314_s2 = inlined_call_operand.hbm [shape: f32[1,128], index: 2, kind: input, shape index: {}]   ;;  %s3315_s3 = inlined_call_operand.hbm [shape: bf16[640,256], index: 3, kind: input, shape index: {}]   ;;  %s3316_s4 = inlined_call_operand.hbm [shape: f32[1,128], index: 4, kind: input, shape index: {}]   ;;  %s3317_s5 = inlined_call_operand.hbm [shape: bf16[640,128], index: 5, kind: input, shape index: {}]   ;;  %s3318_s6 = inlined_call_operand.hbm [shape: f32[1,128], index: 6, kind: input, shape index: {}]   ;;  %s3319_s7 = inlined_call_operand.hbm [shape: bf16[128,128], index: 7, kind: input, shape index: {}]   ;;  %s3320_s8 = inlined_call_operand.hbm [shape: f32[1,128], index: 8, kind: input, shape index: {}]   ;;  %s3321_s9 = inlined_call_operand.hbm [shape: f32[8,128], index: 9, kind: output, shape index: {}]  }
   0x1   :  { %15 = vsyncpa [#allocation6], 0 }
   0x2   :  { %16 = vsyncpa [#allocation9], 0 }
   0x3   :  { %17 = vsyncpa [#allocation12], 0 }
   0x4   :  { %18 = vsyncpa [#allocation15], 0 }
   0x5   :  { %19 = vsyncpa [#allocation4], 0  ;;  %s2889_s30 = smov [#allocation5]   ;;  %s2657_s13 = scalar_lea.hbm %s3313_s1, 2560 }
   0x6   :  { %s35_s10 = sshll.u32 %s2889_s30, 4  ;;  %p2658_p0 = scmp.ne.s32.totalorder %s3313_s1, %s2657_s13  ;;  %s36_s10 = int_to_ptr.vmem [resolvable:$true] %s35_s10 }
   0x7   :  { %p2661_p1 = scmp.lt.u32.totalorder %s2657_s13, %s3313_s1 }
   0x9   :  { %p2663_p2 = pnand %p2661_p1, %p2658_p0 }
   0xb   :  { %2666 = shalt.err (!%p2663_p2)
}
   0xc   :  { %s2667_s18 = scalar_lea.vmem %s36_s10, 2560  ;;  %p2672_p4 = scmp.lt.s32.totalorder %s36_s10, %s36_s10 }
   0xd   :  { %p2668_p3 = scmp.ne.s32.totalorder %s36_s10, %s2667_s18  ;;  %p2673_p5 = scmp.lt.s32.totalorder %s2667_s18, %s2667_s18 }
   0xf   :  { %p2674_p6 = por %p2673_p5, %p2672_p4 }
  0x11   :  { %p2675_p7 = pnand %p2674_p6, %p2668_p3 }
  0x13   :  { %2678 = shalt.err (!%p2675_p7)
}
  0x14   :  { %s2890_s19 = smov 128   ;;  %s2891_s20 = smov 8  }
  0x15   :  { %41 = dma.hbm_to_vmem [thread:$0]  %s3313_s1, 2560, %s36_s10, [#allocation6], %s2890_s19, %s2890_s19, %s2891_s20  }
  0x16   :  { %s2892_s23 = smov [#allocation8]   ;;  %s2893_s25 = smov [#allocation11]  }
  0x17   :  { %s57_s24 = sshll.u32 %s2892_s23, 4  ;;  %s79_s26 = sshll.u32 %s2893_s25, 4  ;;  %s58_s24 = int_to_ptr.vmem [resolvable:$true] %s57_s24  ;;  %s80_s26 = int_to_ptr.vmem [resolvable:$true] %s79_s26 }
  0x18   :  { %s2679_s29 = scalar_lea.hbm %s3315_s3, 10240 }
  0x19   :  { %p2680_p8 = scmp.ne.s32.totalorder %s3315_s3, %s2679_s29  ;;  %p2683_p9 = scmp.lt.u32.totalorder %s2679_s29, %s3315_s3 }
  0x1b   :  { %p2685_p10 = pnand %p2683_p9, %p2680_p8 }
  0x1d   :  { %2688 = shalt.err (!%p2685_p10)
}
  0x1e   :  { %s2689_s1 = scalar_lea.vmem %s58_s24, 10240  ;;  %p2694_p12 = scmp.lt.s32.totalorder %s58_s24, %s58_s24 }
  0x1f   :  { %p2690_p11 = scmp.ne.s32.totalorder %s58_s24, %s2689_s1  ;;  %p2695_p13 = scmp.lt.s32.totalorder %s2689_s1, %s2689_s1 }
  0x21   :  { %p2696_p0 = por %p2695_p13, %p2694_p12 }
  0x23   :  { %p2697_p1 = pnand %p2696_p0, %p2690_p11 }
  0x25   :  { %2700 = shalt.err (!%p2697_p1)
}
  0x26   :  { %63 = dma.hbm_to_vmem [thread:$0]  %s3315_s3, 10240, %s58_s24, [#allocation9], %s2890_s19, %s2890_s19, %s2891_s20  }
  0x27   :  { %s2701_s17 = scalar_lea.hbm %s3317_s5, 5120 }
  0x28   :  { %p2702_p2 = scmp.ne.s32.totalorder %s3317_s5, %s2701_s17  ;;  %p2705_p3 = scmp.lt.u32.totalorder %s2701_s17, %s3317_s5 }
  0x2a   :  { %p2707_p4 = pnand %p2705_p3, %p2702_p2 }
  0x2c   :  { %2710 = shalt.err (!%p2707_p4)
}
  0x2d   :  { %s2711_s25 = scalar_lea.vmem %s80_s26, 5120  ;;  %p2716_p6 = scmp.lt.s32.totalorder %s80_s26, %s80_s26 }
  0x2e   :  { %p2712_p5 = scmp.ne.s32.totalorder %s80_s26, %s2711_s25  ;;  %p2717_p7 = scmp.lt.s32.totalorder %s2711_s25, %s2711_s25 }
  0x30   :  { %p2718_p8 = por %p2717_p7, %p2716_p6 }
  0x32   :  { %p2719_p9 = pnand %p2718_p8, %p2712_p5 }
  0x34   :  { %2722 = shalt.err (!%p2719_p9)
}
  0x35   :  { %s2894_s3 = smov 64   ;;  %s2895_s19 = smov 4  }
  0x36   :  { %85 = dma.hbm_to_vmem [thread:$0]  %s3317_s5, 5120, %s80_s26, [#allocation12], %s2894_s3, %s2894_s3, %s2895_s19  }
  0x37   :  { %s2896_s27 = smov [#allocation14]   ;;  %s2897_s29 = smov [#allocation2]  }
  0x38   :  { %s101_s28 = sshll.u32 %s2896_s27, 4  ;;  %s26_s30 = sshll.u32 %s2897_s29, 4  ;;  %s102_s28 = int_to_ptr.vmem [resolvable:$true] %s101_s28  ;;  %s27_s30 = int_to_ptr.vmem [resolvable:$true] %s26_s30 }
  0x39   :  { %s2723_s13 = scalar_lea.hbm %s3319_s7, 1024 }
  0x3a   :  { %p2724_p10 = scmp.ne.s32.totalorder %s3319_s7, %s2723_s13  ;;  %p2727_p11 = scmp.lt.u32.totalorder %s2723_s13, %s3319_s7 }
  0x3c   :  { %p2729_p12 = pnand %p2727_p11, %p2724_p10 }
  0x3e   :  { %2732 = shalt.err (!%p2729_p12)
}
  0x3f   :  { %s2733_s5 = scalar_lea.vmem %s102_s28, 1024  ;;  %p2738_p0 = scmp.lt.s32.totalorder %s102_s28, %s102_s28 }
  0x40   :  { %p2734_p13 = scmp.ne.s32.totalorder %s102_s28, %s2733_s5  ;;  %p2739_p1 = scmp.lt.s32.totalorder %s2733_s5, %s2733_s5 }
  0x42   :  { %p2740_p2 = por %p2739_p1, %p2738_p0 }
  0x44   :  { %p2741_p3 = pnand %p2740_p2, %p2734_p13 }
  0x46   :  { %2744 = shalt.err (!%p2741_p3)
}
  0x47   :  { %107 = dma.hbm_to_vmem [thread:$0]  %s3319_s7, 1024, %s102_s28, [#allocation15], %s2894_s3, %s2894_s3, %s2895_s19  }
  0x48   :  { %s2745_s21 = scalar_lea.hbm %s3312_s0, 1024 }
  0x49   :  { %p2746_p4 = scmp.ne.s32.totalorder %s3312_s0, %s2745_s21  ;;  %p2749_p5 = scmp.lt.u32.totalorder %s2745_s21, %s3312_s0 }
  0x4b   :  { %p2751_p6 = pnand %p2749_p5, %p2746_p4 }
  0x4d   :  { %2754 = shalt.err (!%p2751_p6)
}
  0x4e   :  { %s2755_s24 = scalar_lea.vmem %s27_s30, 1024  ;;  %p2760_p8 = scmp.lt.s32.totalorder %s27_s30, %s27_s30 }
  0x4f   :  { %p2756_p7 = scmp.ne.s32.totalorder %s27_s30, %s2755_s24  ;;  %p2761_p9 = scmp.lt.s32.totalorder %s2755_s24, %s2755_s24 }
  0x51   :  { %p2762_p10 = por %p2761_p9, %p2760_p8 }
  0x53   :  { %p2763_p11 = pnand %p2762_p10, %p2756_p7 }
  0x55   :  { %2766 = shalt.err (!%p2763_p11)
}
  0x56   :  { %29 = dma.hbm_to_vmem [thread:$0]  %s3312_s0, 1024, %s27_s30, [#allocation3]  }
  0x57   :  { %s2898_s27 = smov [#allocation7]   ;;  %s2899_s29 = smov [#allocation10]  }
  0x58   :  { %s48_s28 = sshll.u32 %s2898_s27, 4  ;;  %s70_s11 = sshll.u32 %s2899_s29, 4  ;;  %s49_s28 = int_to_ptr.vmem [resolvable:$true] %s48_s28  ;;  %s71_s11 = int_to_ptr.vmem [resolvable:$true] %s70_s11 }
  0x59   :  { %s2767_s1 = scalar_lea.hbm %s3314_s2, 16 }
  0x5a   :  { %p2768_p12 = scmp.ne.s32.totalorder %s3314_s2, %s2767_s1  ;;  %p2771_p13 = scmp.lt.u32.totalorder %s2767_s1, %s3314_s2 }
  0x5c   :  { %p2773_p0 = pnand %p2771_p13, %p2768_p12 }
  0x5e   :  { %2776 = shalt.err (!%p2773_p0)
}
  0x5f   :  { %s2777_s0 = scalar_lea.vmem %s49_s28, 16  ;;  %s2781_s30 = scalar_lea.vmem %s49_s28, 32 }
  0x60   :  { %p2778_p1 = scmp.ne.s32.totalorder %s49_s28, %s2777_s0  ;;  %p2782_p2 = scmp.lt.s32.totalorder %s49_s28, %s49_s28 }
  0x61   :  { %p2783_p3 = scmp.lt.s32.totalorder %s2781_s30, %s2777_s0 }
  0x63   :  { %p2784_p4 = por %p2783_p3, %p2782_p2 }
  0x65   :  { %p2785_p5 = pnand %p2784_p4, %p2778_p1 }
  0x67   :  { %2788 = shalt.err (!%p2785_p5)
}
  0x68   :  { %51 = dma.hbm_to_vmem [thread:$0]  %s3314_s2, 16, %s49_s28, [#allocation6]  }
  0x69   :  { %s2789_s21 = scalar_lea.hbm %s3316_s4, 16 }
  0x6a   :  { %p2790_p6 = scmp.ne.s32.totalorder %s3316_s4, %s2789_s21  ;;  %p2793_p7 = scmp.lt.u32.totalorder %s2789_s21, %s3316_s4 }
  0x6c   :  { %p2795_p8 = pnand %p2793_p7, %p2790_p6 }
  0x6e   :  { %2798 = shalt.err (!%p2795_p8)
}
  0x6f   :  { %s2799_s24 = scalar_lea.vmem %s71_s11, 16  ;;  %s2803_s7 = scalar_lea.vmem %s71_s11, 32 }
  0x70   :  { %p2800_p9 = scmp.ne.s32.totalorder %s71_s11, %s2799_s24  ;;  %p2804_p10 = scmp.lt.s32.totalorder %s71_s11, %s71_s11 }
  0x71   :  { %p2805_p11 = scmp.lt.s32.totalorder %s2803_s7, %s2799_s24 }
  0x73   :  { %p2806_p12 = por %p2805_p11, %p2804_p10 }
  0x75   :  { %p2807_p13 = pnand %p2806_p12, %p2800_p9 }
  0x77   :  { %2810 = shalt.err (!%p2807_p13)
}
  0x78   :  { %73 = dma.hbm_to_vmem [thread:$0]  %s3316_s4, 16, %s71_s11, [#allocation9]  }
  0x79   :  { %s2900_s27 = smov [#allocation13]   ;;  %s2901_s29 = smov [#allocation16]  }
  0x7a   :  { %s92_s28 = sshll.u32 %s2900_s27, 4  ;;  %s114_s12 = sshll.u32 %s2901_s29, 4  ;;  %s93_s28 = int_to_ptr.vmem [resolvable:$true] %s92_s28  ;;  %s115_s12 = int_to_ptr.vmem [resolvable:$true] %s114_s12 }
  0x7b   :  { %s2811_s10 = scalar_lea.hbm %s3318_s6, 16 }
  0x7c   :  { %p2812_p0 = scmp.ne.s32.totalorder %s3318_s6, %s2811_s10  ;;  %p2815_p1 = scmp.lt.u32.totalorder %s2811_s10, %s3318_s6 }
  0x7e   :  { %p2817_p2 = pnand %p2815_p1, %p2812_p0 }
  0x80   :  { %2820 = shalt.err (!%p2817_p2)
}
  0x81   :  { %s2821_s4 = scalar_lea.vmem %s93_s28, 16  ;;  %s2825_s11 = scalar_lea.vmem %s93_s28, 32 }
  0x82   :  { %p2822_p3 = scmp.ne.s32.totalorder %s93_s28, %s2821_s4  ;;  %p2826_p4 = scmp.lt.s32.totalorder %s93_s28, %s93_s28 }
  0x83   :  { %p2827_p5 = scmp.lt.s32.totalorder %s2825_s11, %s2821_s4 }
  0x85   :  { %p2828_p6 = por %p2827_p5, %p2826_p4 }
  0x87   :  { %p2829_p7 = pnand %p2828_p6, %p2822_p3 }
  0x89   :  { %2832 = shalt.err (!%p2829_p7)
}
  0x8a   :  { %95 = dma.hbm_to_vmem [thread:$0]  %s3318_s6, 16, %s93_s28, [#allocation12]  }
  0x8b   :  { %s2833_s18 = scalar_lea.hbm %s3320_s8, 16 }
  0x8c   :  { %p2834_p8 = scmp.ne.s32.totalorder %s3320_s8, %s2833_s18  ;;  %p2837_p9 = scmp.lt.u32.totalorder %s2833_s18, %s3320_s8 }
  0x8e   :  { %p2839_p10 = pnand %p2837_p9, %p2834_p8 }
  0x90   :  { %2842 = shalt.err (!%p2839_p10)
}
  0x91   :  { %s2843_s20 = scalar_lea.vmem %s115_s12, 16  ;;  %s2847_s24 = scalar_lea.vmem %s115_s12, 32 }
  0x92   :  { %p2844_p11 = scmp.ne.s32.totalorder %s115_s12, %s2843_s20  ;;  %p2848_p12 = scmp.lt.s32.totalorder %s115_s12, %s115_s12 }
  0x93   :  { %p2849_p13 = scmp.lt.s32.totalorder %s2847_s24, %s2843_s20 }
  0x95   :  { %p2850_p0 = por %p2849_p13, %p2848_p12 }
  0x97   :  { %p2851_p1 = pnand %p2850_p0, %p2844_p11 }
  0x99   :  { %2854 = shalt.err (!%p2851_p1)
}
  0x9a   :  { %117 = dma.hbm_to_vmem [thread:$0]  %s3320_s8, 16, %s115_s12, [#allocation15]  }
  0x9b   :  { %2877 = dma.done.wait [#allocation3], 1024  }
  0x9c   :  { %2878 = vsyncadd [#allocation3], 4294966272 }
  0x9d   :  { %2879 = dma.done.wait [#allocation6], 2576  }
  0x9e   :  { %2880 = vsyncadd [#allocation6], 4294964720 }
  0x9f   :  { %2881 = dma.done.wait [#allocation9], 10256  }
  0xa0   :  { %2882 = vsyncadd [#allocation9], 4294957040 }
  0xa1   :  { %2883 = dma.done.wait [#allocation12], 5136  }
  0xa2   :  { %2884 = vsyncadd [#allocation12], 4294962160 }
  0xa3   :  { %2885 = dma.done.wait [#allocation15], 1040  }
  0xa4   :  { %2886 = vsyncadd [#allocation15], 4294966256  ;;  %v146_v0 = vld [vmem:[#allocation2] sm:$0xff]  ;;  %v147_v1 = vld [vmem:[#allocation2 + $0x8] sm:$0xff]  ;;  %s2902_s8 = smov 96   ;;  %s2903_s2 = smov 32  }
  0xa5   :  { %v3070_v2 = vpack.c.bf16 %v146_v0, %v146_v0  ;;  %v3072_v3 = vpack.c.bf16 %v147_v1, %v147_v1  ;;  %v2459_v5 = vld [vmem:[#allocation5 + $0x4] ss:$8 sps:$4 sm:$0xff]   ;;  %v2461_v6 = vld [vmem:[#allocation5] ss:$8 sps:$4 sm:$0xff]   ;;  %v2462_v8 = vld [vmem:[#allocation5 + $0x14] ss:$8 sps:$4 sm:$0xff]  }
  0xa6   :  { %503 = vmatprep.subr.bf16.mxu0 %v2459_v5  ;;  %v150_v9 = vld [vmem:[#allocation2 + $0x10] sm:$0xff]  ;;  %v2465_v11 = vld [vmem:[#allocation5 + $0x24] ss:$8 sps:$4 sm:$0xff]   ;;  %v152_v12 = vld [vmem:[#allocation2 + $0x18] sm:$0xff]  ;;  %vm172_vm0 = vcmask 785408   ;;  %vm219_vm1 = vcmask 1043456  }
  0xa7   :  { %174 = vrot.lane.b32.xlu1 %v3070_v2, %s2894_s3  ;;  %v166_v4 = vrot.slane %v3070_v2, 4  ;;  %v167_v7 = vrot.slane %v3072_v3, 4  ;;  %504 = vmatpush1.bf16.msra.mxu0 %v2461_v6  ;;  %v2464_v10 = vld [vmem:[#allocation5 + $0x10] ss:$8 sps:$4 sm:$0xff]   ;;  %v3082_v13 = vpack.c.bf16 %v150_v9, %v150_v9  ;;  %v2467_v14 = vld [vmem:[#allocation5 + $0x20] ss:$8 sps:$4 sm:$0xff]   ;;  %v3085_v15 = vpack.c.bf16 %v152_v12, %v152_v12 }
  0xa8   :  { %505 = vmatprep.subr.bf16.mxu0 %v2462_v8  ;;  %v2468_v16 = vld [vmem:[#allocation5 + $0x34] ss:$8 sps:$4 sm:$0xff]   ;;  %v2470_v18 = vld [vmem:[#allocation5 + $0x30] ss:$8 sps:$4 sm:$0xff]   ;;  %v2471_v20 = vld [vmem:[#allocation5 + $0x44] ss:$8 sps:$4 sm:$0xff]  }
  0xa9   :  { %168 = vrot.lane.b32.xlu0 %v166_v4, %s2902_s8  ;;  %v187_v17 = vrot.slane %v3082_v13, 4  ;;  %v198_v19 = vrot.slane %v3085_v15, 4  ;;  %v154_v21 = vld [vmem:[#allocation2 + $0x20] sm:$0xff]  ;;  %v2474_v23 = vld [vmem:[#allocation5 + $0x54] ss:$8 sps:$4 sm:$0xff]   ;;  %v156_v24 = vld [vmem:[#allocation2 + $0x28] sm:$0xff] }
  0xaa   :  { %v2473_v22 = vld [vmem:[#allocation5 + $0x40] ss:$8 sps:$4 sm:$0xff]   ;;  %v2476_v25 = vld [vmem:[#allocation5 + $0x50] ss:$8 sps:$4 sm:$0xff]   ;;  %v3095_v26 = vpack.c.bf16 %v154_v21, %v154_v21  ;;  %v2477_v27 = vld [vmem:[#allocation5 + $0x64] ss:$8 sps:$4 sm:$0xff]   ;;  %v3098_v28 = vpack.c.bf16 %v156_v24, %v156_v24 }
  0xab   :  { %176 = vrot.lane.b32.xlu1 %v3072_v3, %s2894_s3  ;;  %506 = vmatpush1.bf16.msra.mxu0 %v2464_v10  ;;  %v2479_v29 = vld [vmem:[#allocation5 + $0x60] ss:$8 sps:$4 sm:$0xff]   ;;  %v2480_v31 = vld [vmem:[#allocation5 + $0x74] ss:$8 sps:$4 sm:$0xff]   ;;  %v2482_v34 = vld [vmem:[#allocation5 + $0x70] ss:$8 sps:$4 sm:$0xff]  }
  0xac   :  { %507 = vmatprep.subr.bf16.mxu0 %v2465_v11  ;;  %v209_v30 = vrot.slane %v3095_v26, 4  ;;  %v274_v32 = vrot.slane %v3098_v28, 4  ;;  %v158_v33 = vld [vmem:[#allocation2 + $0x30] sm:$0xff]  ;;  %v2483_v35 = vld [vmem:[#allocation5 + $0x84] ss:$8 sps:$4 sm:$0xff]   ;;  %v161_v39 = vld [vmem:[#allocation2 + $0x38] sm:$0xff] }
  0xad   :  { %170 = vrot.lane.b32.xlu0 %v167_v7, %s2902_s8  ;;  %v2485_v36 = vld [vmem:[#allocation5 + $0x80] ss:$8 sps:$4 sm:$0xff]   ;;  %v3109_v37 = vpack.c.bf16 %v158_v33, %v158_v33  ;;  %v2486_v38 = vld [vmem:[#allocation5 + $0x94] ss:$8 sps:$4 sm:$0xff]   ;;  %v2488_v40 = vld [vmem:[#allocation5 + $0x90] ss:$8 sps:$4 sm:$0xff]   ;;  %v3117_v42 = vpack.c.bf16 %v161_v39, %v161_v39 }
  0xae   :  { %v2489_v44 = vld [vmem:[#allocation8 + $0x4] ss:$8 sps:$4 sm:$0xff]   ;;  %v2491_v45 = vld [vmem:[#allocation8] ss:$8 sps:$4 sm:$0xff]   ;;  %v2492_v46 = vld [vmem:[#allocation8 + $0x14] ss:$8 sps:$4 sm:$0xff]  }
  0xaf   :  { %182 = vrot.lane.b32.xlu1 %v167_v7, %s2903_s2  ;;  %508 = vmatpush1.bf16.msra.mxu0 %v2467_v14  ;;  %v285_v41 = vrot.slane %v3109_v37, 4  ;;  %v298_v43 = vrot.slane %v3117_v42, 4  ;;  %v2494_v47 = vld [vmem:[#allocation8 + $0x10] ss:$8 sps:$4 sm:$0xff]   ;;  %v2495_v48 = vld [vmem:[#allocation8 + $0x24] ss:$8 sps:$4 sm:$0xff]  }
  0xb0   :  { %509 = vmatprep.subr.bf16.mxu0 %v2468_v16  ;;  %1260 = vmatprep.subr.bf16.mxu1 %v2489_v44  ;;  %v2497_v49 = vld [vmem:[#allocation8 + $0x20] ss:$8 sps:$4 sm:$0xff]   ;;  %v2498_v50 = vld [vmem:[#allocation8 + $0x34] ss:$8 sps:$4 sm:$0xff]   ;;  %v2500_v51 = vld [vmem:[#allocation8 + $0x30] ss:$8 sps:$4 sm:$0xff]  }
  0xb1   :  { %180 = vrot.lane.b32.xlu0 %v166_v4, %s2903_s2  ;;  %1261 = vmatpush1.bf16.msra.mxu1 %v2491_v45  ;;  %v2501_v52 = vld [vmem:[#allocation8 + $0x44] ss:$8 sps:$4 sm:$0xff]   ;;  %v2503_v54 = vld [vmem:[#allocation8 + $0x40] ss:$8 sps:$4 sm:$0xff]   ;;  %v2504_v55 = vld [vmem:[#allocation8 + $0x54] ss:$8 sps:$4 sm:$0xff]  }
  0xb2   :  { %1262 = vmatprep.subr.bf16.mxu1 %v2492_v46  ;;  %v2506_v58 = vld [vmem:[#allocation8 + $0x50] ss:$8 sps:$4 sm:$0xff]   ;;  %vm184_vm2 = vcmask 261120   ;;  %v2507_v59 = vld [vmem:[#allocation8 + $0x64] ss:$8 sps:$4 sm:$0xff]   ;;  %vm178_vm3 = vcmask 523264  }
  0xb3   :  { %191 = vrot.lane.b32.xlu1 %v3082_v13, %s2894_s3  ;;  %510 = vmatpush1.bf16.msra.mxu0 %v2470_v18  ;;  %v2509_v1 = vld [vmem:[#allocation8 + $0x60] ss:$8 sps:$4 sm:$0xff]   ;;  %v2510_v5 = vld [vmem:[#allocation8 + $0x74] ss:$8 sps:$4 sm:$0xff]   ;;  %v2512_v8 = vld [vmem:[#allocation8 + $0x70] ss:$8 sps:$4 sm:$0xff]  }
  0xb4   :  { %511 = vmatprep.subr.bf16.mxu0 %v2471_v20  ;;  %v2513_v10 = vld [vmem:[#allocation8 + $0x84] ss:$8 sps:$4 sm:$0xff]   ;;  %vm2906_vm4 = vmmov 0  }
  0xb5   :  { %188 = vrot.lane.b32.xlu0 %v187_v17, %s2902_s8  ;;  %1263 = vmatpush1.bf16.msra.mxu1 %v2494_v47 }
  0xb6   :  { %1264 = vmatprep.subr.bf16.mxu1 %v2495_v48 }
  0xb7   :  { %199 = vrot.lane.b32.xlu1 %v198_v19, %s2902_s8  ;;  %512 = vmatpush1.bf16.msra.mxu0 %v2473_v22 }
  0xb8   :  { %513 = vmatprep.subr.bf16.mxu0 %v2474_v23 }
  0xb9   :  { %194 = vrot.lane.b32.xlu0 %v187_v17, %s2903_s2  ;;  %1265 = vmatpush1.bf16.msra.mxu1 %v2497_v49 }
  0xba   :  { %1266 = vmatprep.subr.bf16.mxu1 %v2498_v50 }
  0xbb   :  { %205 = vrot.lane.b32.xlu1 %v198_v19, %s2903_s2  ;;  %514 = vmatpush1.bf16.msra.mxu0 %v2476_v25 }
  0xbc   :  { %515 = vmatprep.subr.bf16.mxu0 %v2477_v27 }
  0xbd   :  { %202 = vrot.lane.b32.xlu0 %v3085_v15, %s2894_s3  ;;  %1267 = vmatpush1.bf16.msra.mxu1 %v2500_v51 }
  0xbe   :  { %1268 = vmatprep.subr.bf16.mxu1 %v2501_v52 }
  0xbf   :  { %213 = vrot.lane.b32.xlu1 %v3095_v26, %s2894_s3  ;;  %516 = vmatpush1.bf16.msra.mxu0 %v2479_v29 }
  0xc0   :  { %517 = vmatprep.subr.bf16.mxu0 %v2480_v31 }
  0xc1   :  { %210 = vrot.lane.b32.xlu0 %v209_v30, %s2902_s8  ;;  %1269 = vmatpush1.bf16.msra.mxu1 %v2503_v54 }
  0xc2   :  { %1270 = vmatprep.subr.bf16.mxu1 %v2504_v55 }
  0xc3   :  { %275 = vrot.lane.b32.xlu1 %v274_v32, %s2902_s8  ;;  %518 = vmatpush1.bf16.msra.mxu0 %v2482_v34 }
  0xc4   :  { %519 = vmatprep.subr.bf16.mxu0 %v2483_v35 }
  0xc5   :  { %216 = vrot.lane.b32.xlu0 %v209_v30, %s2903_s2  ;;  %1271 = vmatpush1.bf16.msra.mxu1 %v2506_v58 }
  0xc6   :  { %1272 = vmatprep.subr.bf16.mxu1 %v2507_v59 }
  0xc7   :  { %281 = vrot.lane.b32.xlu1 %v274_v32, %s2903_s2  ;;  %520 = vmatpush1.bf16.msra.mxu0 %v2485_v36 }
  0xc8   :  { %521 = vmatprep.subr.bf16.mxu0 %v2486_v38 }
  0xc9   :  { %278 = vrot.lane.b32.xlu0 %v3098_v28, %s2894_s3  ;;  %1273 = vmatpush1.bf16.msra.mxu1 %v2509_v1 }
  0xca   :  { %1274 = vmatprep.subr.bf16.mxu1 %v2510_v5 }
  0xcb   :  { %289 = vrot.lane.b32.xlu1 %v3109_v37, %s2894_s3  ;;  %522 = vmatpush1.bf16.msra.mxu0 %v2488_v40 }
  0xcd   :  { %286 = vrot.lane.b32.xlu0 %v285_v41, %s2902_s8  ;;  %1275 = vmatpush1.bf16.msra.mxu1 %v2512_v8 }
  0xce   :  { %1276 = vmatprep.subr.bf16.mxu1 %v2513_v10 }
  0xcf   :  { %299 = vrot.lane.b32.xlu1 %v285_v41, %s2902_s8 }
  0xd1   :  { %292 = vrot.lane.b32.xlu0 %v285_v41, %s2903_s2 }
  0xd3   :  { %304 = vrot.lane.b32.xlu1 %v3109_v37, %s2894_s3 }
  0xd5   :  { %301 = vrot.lane.b32.xlu0 %v298_v43, %s2902_s8 }
  0xd7   :  { %309 = vrot.lane.b32.xlu1 %v285_v41, %s2903_s2 }
  0xd9   :  { %306 = vrot.lane.b32.xlu0 %v3117_v42, %s2894_s3  ;;  %s2907_s3 = smov [#allocation17]  }
  0xda   :  { %s2119_s19 = sshll.u32 %s2907_s3, 4  ;;  %s2120_s19 = int_to_ptr.vmem [resolvable:$true] %s2119_s19 }
  0xdb   :  { %s2855_s27 = scalar_lea.vmem %s2120_s19, 128  ;;  %p2860_p3 = scmp.lt.s32.totalorder %s2120_s19, %s2120_s19 }
  0xdc   :  { %p2856_p2 = scmp.ne.s32.totalorder %s2120_s19, %s2855_s27  ;;  %p2861_p4 = scmp.lt.s32.totalorder %s2855_s27, %s2855_s27 }
  0xdd   :  { %311 = vrot.lane.b32.xlu0 %v298_v43, %s2903_s2 }
  0xde   :  { %p2862_p5 = por %p2861_p4, %p2860_p3 }
  0xe0   :  { %p2863_p6 = pnand %p2862_p5, %p2856_p2 }
 0x119   :  { %v175_v53 = vpop.permute.xlu1 %174 }
 0x11b   :  { %v169_v56 = vpop.permute.xlu0 %168 }
 0x11d   :  { %v177_v57 = vpop.permute.xlu1 %176 }
 0x11f   :  { %v171_v60 = vpop.permute.xlu0 %170 }
 0x120   :  { %v173_v61 = vsel %vm172_vm0, %v169_v56, %v171_v60  ;;  %v226_v62 = vsel %vm219_vm1, %v3072_v3, %v171_v60 }
 0x121   :  { %v183_v63 = vpop.permute.xlu1 %182  ;;  %2152 = vmatprep.mubr.msk.bf16.mxu0 %vm184_vm2, %v226_v62  ;;  %v222_v0 = vsel %vm219_vm1, %v3070_v2, %v173_v61  ;;  %v179_v2 = vsel %vm178_vm3, %v175_v53, %v177_v57 }
 0x122   :  { %536 = vmatmul.mubr.bf16.vlgmr.msra.gmra.mrb[0].mxu0 %v222_v0  ;;  %v233_v4 = vsel %vm219_vm1, %v177_v57, %v183_v63 }
 0x123   :  { %v181_v6 = vpop.permute.xlu0 %180  ;;  %2153 = vmatprep.mubr.msk.bf16.mxu0 %vm184_vm2, %v233_v4 }
 0x124   :  { %v185_v9 = vsel %vm184_vm2, %v181_v6, %v183_v63 }
 0x125   :  { %v192_v7 = vpop.permute.xlu1 %191  ;;  %v229_v14 = vsel %vm219_vm1, %v179_v2, %v185_v9  ;;  %v2516_v2 = vld [vmem:[#allocation8 + $0x94] ss:$8 sps:$4 sm:$0xff]  }
 0x126   :  { %v193_v32 = vsel %vm178_vm3, %v177_v57, %v192_v7 }
 0x127   :  { %v189_v11 = vpop.permute.xlu0 %188 }
 0x128   :  { %v239_v12 = vsel %vm219_vm1, %v3082_v13, %v189_v11  ;;  %v190_v19 = vsel %vm172_vm0, %v171_v60, %v189_v11 }
 0x129   :  { %v200_v16 = vpop.permute.xlu1 %199  ;;  %v235_v22 = vsel %vm219_vm1, %v3072_v3, %v190_v19 }
 0x12a   :  { %546 = vmatmul.mubr.bf16.gmra.mrb[4].mxu0 %v229_v14  ;;  %v252_v33 = vsel %vm219_vm1, %v3085_v15, %v200_v16  ;;  %v201_v40 = vsel %vm172_vm0, %v189_v11, %v200_v16 }
 0x12b   :  { %v195_v17 = vpop.permute.xlu0 %194  ;;  %2154 = vmatprep.mubr.msk.bf16.mxu0 %vm184_vm2, %v239_v12  ;;  %v248_v46 = vsel %vm219_vm1, %v3082_v13, %v201_v40  ;;  %v2518_v12 = vld [vmem:[#allocation8 + $0x90] ss:$8 sps:$4 sm:$0xff]  }
 0x12c   :  { %v246_v21 = vsel %vm219_vm1, %v192_v7, %v195_v17  ;;  %v196_v27 = vsel %vm184_vm2, %v183_v63, %v195_v17 }
 0x12d   :  { %v206_v18 = vpop.permute.xlu1 %205  ;;  %v242_v3 = vsel %vm219_vm1, %v193_v32, %v196_v27  ;;  %v2536_v27 = vld [vmem:[#allocation8 + $0xf0] ss:$8 sps:$4 sm:$0xff]  }
 0x12e   :  { %v207_v53 = vsel %vm184_vm2, %v195_v17, %v206_v18  ;;  %v2522_v17 = vld [vmem:[#allocation8 + $0xb4] ss:$8 sps:$4 sm:$0xff]  }
 0x12f   :  { %v203_v20 = vpop.permute.xlu0 %202 }
 0x130   :  { %v259_v44 = vsel %vm219_vm1, %v203_v20, %v206_v18  ;;  %v204_v54 = vsel %vm178_vm3, %v192_v7, %v203_v20 }
 0x131   :  { %v214_v23 = vpop.permute.xlu1 %213  ;;  %v255_v58 = vsel %vm219_vm1, %v204_v54, %v207_v53 }
 0x132   :  { %556 = vmatmul.mubr.bf16.gmra.mrb[8].mxu0 %v235_v22  ;;  %v215_v6 = vsel %vm178_vm3, %v203_v20, %v214_v23  ;;  %v2525_v20 = vld [vmem:[#allocation8 + $0xc4] ss:$8 sps:$4 sm:$0xff]   ;;  %v2530_v22 = vld [vmem:[#allocation8 + $0xd0] ss:$8 sps:$4 sm:$0xff]  }
 0x133   :  { %2155 = vmatprep.mubr.msk.bf16.mxu0 %vm184_vm2, %v246_v21  ;;  %v211_v24 = vpop.permute.xlu0 %210  ;;  %v2528_v21 = vld [vmem:[#allocation8 + $0xd4] ss:$8 sps:$4 sm:$0xff]  }
 0x134   :  { %v265_v56 = vsel %vm219_vm1, %v3095_v26, %v211_v24  ;;  %v212_v62 = vsel %vm172_vm0, %v200_v16, %v211_v24  ;;  %v2519_v16 = vld [vmem:[#allocation8 + $0xa4] ss:$8 sps:$4 sm:$0xff]  }
 0x135   :  { %v276_v25 = vpop.permute.xlu1 %275  ;;  %v261_v4 = vsel %vm219_vm1, %v3085_v15, %v212_v62 }
 0x136   :  { %v277_v29 = vsel %vm172_vm0, %v211_v24, %v276_v25  ;;  %v319_v8 = vsel %vm219_vm1, %v3098_v28, %v276_v25  ;;  %v2533_v24 = vld [vmem:[#allocation8 + $0xe0] ss:$8 sps:$4 sm:$0xff]  }
 0x137   :  { %v217_v30 = vpop.permute.xlu0 %216  ;;  %v315_v31 = vsel %vm219_vm1, %v3095_v26, %v277_v29  ;;  %v2539_v29 = vld [vmem:[#allocation8 + $0x104] ss:$8 sps:$4 sm:$0xff]  }
 0x138   :  { %v272_v1 = vsel %vm219_vm1, %v214_v23, %v217_v30  ;;  %v218_v7 = vsel %vm184_vm2, %v206_v18, %v217_v30  ;;  %v2524_v18 = vld [vmem:[#allocation8 + $0xb0] ss:$8 sps:$4 sm:$0xff]  }
 0x139   :  { %v282_v34 = vpop.permute.xlu1 %281  ;;  %v268_v9 = vsel %vm219_vm1, %v215_v6, %v218_v7  ;;  %v2537_v6 = vld [vmem:[#allocation8 + $0x100] ss:$8 sps:$4 sm:$0xff]   ;;  %v2542_v7 = vld [vmem:[#allocation8 + $0x114] ss:$8 sps:$4 sm:$0xff]  }
 0x13a   :  { %566 = vmatmul.mubr.bf16.gmra.mrb[12].mxu0 %v242_v3  ;;  %v283_v35 = vsel %vm184_vm2, %v217_v30, %v282_v34  ;;  %v3207_v3 = vld [vmem:[#allocation7] ss:$0 sm:$0xff] }
 0x13b   :  { %2156 = vmatprep.mubr.msk.bf16.mxu0 %vm184_vm2, %v252_v33  ;;  %v279_v36 = vpop.permute.xlu0 %278 }
 0x13c   :  { %v280_v38 = vsel %vm178_vm3, %v214_v23, %v279_v36  ;;  %v326_v10 = vsel %vm219_vm1, %v279_v36, %v282_v34  ;;  %v2531_v23 = vld [vmem:[#allocation8 + $0xe4] ss:$8 sps:$4 sm:$0xff]  }
 0x13d   :  { %v322_v39 = vsel %vm219_vm1, %v280_v38, %v283_v35  ;;  %v290_v43 = vpop.permute.xlu1 %289 }
 0x13e   :  { %v291_v48 = vsel %vm178_vm3, %v279_v36, %v290_v43 }
 0x13f   :  { %v287_v41 = vpop.permute.xlu0 %286 }
 0x140   :  { %v288_v45 = vsel %vm172_vm0, %v276_v25, %v287_v41  ;;  %v332_v15 = vsel %vm219_vm1, %v3109_v37, %v287_v41  ;;  %v2534_v25 = vld [vmem:[#allocation8 + $0xf4] ss:$8 sps:$4 sm:$0xff]  }
 0x141   :  { %v328_v47 = vsel %vm219_vm1, %v3098_v28, %v288_v45  ;;  %v300_v50 = vpop.permute.xlu1 %299  ;;  %v2515_v28 = vld [vmem:[#allocation8 + $0x80] ss:$8 sps:$4 sm:$0xff]  }
 0x142   :  { %576 = vmatmul.mubr.bf16.gmra.mrb[16].mxu0 %v248_v46  ;;  %1277 = vmatpush1.bf16.msra.mxu1 %v2515_v28 }
 0x143   :  { %2157 = vmatprep.mubr.msk.bf16.mxu0 %vm184_vm2, %v259_v44  ;;  %v293_v49 = vpop.permute.xlu0 %292  ;;  %1278 = vmatprep.subr.bf16.mxu1 %v2516_v2  ;;  %v2545_v2 = vld [vmem:[#allocation8 + $0x124] ss:$8 sps:$4 sm:$0xff]  }
 0x144   :  { %v294_v51 = vsel %vm184_vm2, %v282_v34, %v293_v49  ;;  %v339_v11 = vsel %vm219_vm1, %v290_v43, %v293_v49 }
 0x145   :  { %v335_v52 = vsel %vm219_vm1, %v291_v48, %v294_v51  ;;  %v305_v13 = vpop.permute.xlu1 %304 }
 0x146   :  { %1279 = vmatpush1.bf16.msra.mxu1 %v2518_v12 }
 0x147   :  { %v302_v55 = vpop.permute.xlu0 %301  ;;  %1280 = vmatprep.subr.bf16.mxu1 %v2519_v16 }
 0x148   :  { %v303_v57 = vsel %vm172_vm0, %v300_v50, %v302_v55  ;;  %v346_v14 = vsel %vm219_vm1, %v3117_v42, %v302_v55  ;;  %v2527_v42 = vld [vmem:[#allocation8 + $0xc0] ss:$8 sps:$4 sm:$0xff]  }
 0x149   :  { %v342_v59 = vsel %vm219_vm1, %v3109_v37, %v303_v57  ;;  %v310_v61 = vpop.permute.xlu1 %309  ;;  %v2521_v37 = vld [vmem:[#allocation8 + $0xa0] ss:$8 sps:$4 sm:$0xff]  }
 0x14a   :  { %586 = vmatmul.mubr.bf16.gmra.mrb[20].mxu0 %v255_v58  ;;  %1281 = vmatpush1.bf16.msra.mxu1 %v2521_v37 }
 0x14b   :  { %2158 = vmatprep.mubr.msk.bf16.mxu0 %vm184_vm2, %v265_v56  ;;  %v307_v60 = vpop.permute.xlu0 %306  ;;  %1282 = vmatprep.subr.bf16.mxu1 %v2522_v17 }
 0x14c   :  { %v308_v63 = vsel %vm178_vm3, %v305_v13, %v307_v60 }
 0x14e   :  { %1283 = vmatpush1.bf16.msra.mxu1 %v2524_v18  ;;  %v2543_v18 = vld [vmem:[#allocation8 + $0x120] ss:$8 sps:$4 sm:$0xff]  }
 0x14f   :  { %v312_v0 = vpop.permute.xlu0 %311  ;;  %1284 = vmatprep.subr.bf16.mxu1 %v2525_v20  ;;  %v2548_v20 = vld [vmem:[#allocation8 + $0x134] ss:$8 sps:$4 sm:$0xff]  }
 0x150   :  { %v313_v26 = vsel %vm184_vm2, %v310_v61, %v312_v0  ;;  %v353_v19 = vsel %vm219_vm1, %v307_v60, %v312_v0 }
 0x151   :  { %v349_v5 = vsel %vm219_vm1, %v308_v63, %v313_v26 }
 0x152   :  { %596 = vmatmul.mubr.bf16.gmra.mrb[24].mxu0 %v261_v4  ;;  %1285 = vmatpush1.bf16.msra.mxu1 %v2527_v42 }
 0x153   :  { %2159 = vmatprep.mubr.msk.bf16.mxu0 %vm184_vm2, %v272_v1  ;;  %1286 = vmatprep.subr.bf16.mxu1 %v2528_v21 }
 0x156   :  { %1287 = vmatpush1.bf16.msra.mxu1 %v2530_v22 }
 0x157   :  { %1288 = vmatprep.subr.bf16.mxu1 %v2531_v23 }
 0x15a   :  { %606 = vmatmul.mubr.bf16.gmra.mrb[28].mxu0 %v268_v9  ;;  %1289 = vmatpush1.bf16.msra.mxu1 %v2533_v24  ;;  %v2546_v24 = vld [vmem:[#allocation8 + $0x130] ss:$8 sps:$4 sm:$0xff]  }
 0x15b   :  { %2160 = vmatprep.mubr.msk.bf16.mxu0 %vm184_vm2, %v319_v8  ;;  %1290 = vmatprep.subr.bf16.mxu1 %v2534_v25 }
 0x15e   :  { %1291 = vmatpush1.bf16.msra.mxu1 %v2536_v27  ;;  %v2551_v27 = vld [vmem:[#allocation8 + $0x144] ss:$8 sps:$4 sm:$0xff]  }
 0x15f   :  { %1343 = vmatprep.subr.bf16.mxu1 %v2539_v29 }
 0x162   :  { %616 = vmatmul.mubr.bf16.gmra.mrb[32].mxu0 %v315_v31 }
 0x163   :  { %2161 = vmatprep.mubr.msk.bf16.mxu0 %vm184_vm2, %v326_v10 }
 0x16a   :  { %626 = vmatmul.mubr.bf16.gmra.mrb[36].mxu0 %v322_v39 }
 0x16b   :  { %2162 = vmatprep.mubr.msk.bf16.mxu0 %vm184_vm2, %v332_v15 }
 0x172   :  { %636 = vmatmul.mubr.bf16.gmra.mrb[40].mxu0 %v328_v47 }
 0x173   :  { %2163 = vmatprep.mubr.msk.bf16.mxu0 %vm184_vm2, %v339_v11  ;;  %v2540_v11 = vld [vmem:[#allocation8 + $0x110] ss:$8 sps:$4 sm:$0xff]  }
 0x17a   :  { %646 = vmatmul.mubr.bf16.gmra.mrb[44].mxu0 %v335_v52 }
 0x17b   :  { %2164 = vmatprep.mubr.msk.bf16.mxu0 %vm184_vm2, %v346_v14 }
 0x182   :  { %656 = vmatmul.mubr.bf16.gmra.mrb[48].mxu0 %v342_v59 }
 0x183   :  { %2165 = vmatprep.mubr.msk.bf16.mxu0 %vm184_vm2, %v353_v19 }
 0x18a   :  { %666 = vmatmul.mubr.bf16.gmra.mrb[52].mxu0 %v349_v5 }
 0x1f5   :  { %v537_v30 = vpop.f32.mrb[0].mxu0 }
 0x1f6   :  { %v539_v31 = vpop.f32.mrb[1].mxu0 }
 0x1f7   :  { %v676_v32 = vmax.f32 %v537_v30, %v539_v31  ;;  %v541_v33 = vpop.f32.mrb[2].mxu0 }
 0x1f8   :  { %v543_v34 = vpop.f32.mrb[3].mxu0 }
 0x1f9   :  { %v677_v35 = vmax.f32 %v541_v33, %v543_v34  ;;  %v711_v36 = vadd.f32 %v3207_v3, %v676_v32 }
 0x1fb   :  { %v712_v38 = vadd.f32 %v3207_v3, %v677_v35  ;;  %v2549_v35 = vld [vmem:[#allocation8 + $0x140] ss:$8 sps:$4 sm:$0xff]  }
 0x1fd   :  { %v739_v39 = vmax.f32 %v711_v36, %v712_v38  ;;  %v547_v40 = vpop.f32.mrb[4].mxu0  ;;  %v2554_v36 = vld [vmem:[#allocation8 + $0x154] ss:$8 sps:$4 sm:$0xff]  }
 0x1fe   :  { %v549_v41 = vpop.f32.mrb[5].mxu0 }
 0x1ff   :  { %v678_v43 = vmax.f32 %v547_v40, %v549_v41  ;;  %v551_v44 = vpop.f32.mrb[6].mxu0  ;;  %v740_v52 = vmax.f32 %v739_v39, 0.0  ;;  %v2609_v40 = vld [vmem:[#allocation11 + $0x40] sm:$0xff]  }
 0x200   :  { %v553_v45 = vpop.f32.mrb[7].mxu0  ;;  %v2610_v41 = vld [vmem:[#allocation11] sm:$0xff]   ;;  %2298 = vmatprep.subr.bf16.mxu0 %v2609_v40  ;;  %v2570_v40 = vld [vmem:[#allocation8 + $0x1b0] ss:$8 sps:$4 sm:$0xff]  }
 0x201   :  { %v679_v46 = vmax.f32 %v551_v44, %v553_v45  ;;  %v713_v47 = vadd.f32 %v3207_v3, %v678_v43  ;;  %v2611_v43 = vld [vmem:[#allocation11 + $0x48] sm:$0xff]   ;;  %2299 = vmatpush3.bf16.msra.mxu0 %v2610_v41 }
 0x202   :  { %2300 = vmatprep.subr.bf16.mxu0 %v2611_v43  ;;  %v2575_v43 = vld [vmem:[#allocation8 + $0x1c4] ss:$8 sps:$4 sm:$0xff]  }
 0x203   :  { %v714_v48 = vadd.f32 %v3207_v3, %v679_v46  ;;  %v2552_v46 = vld [vmem:[#allocation8 + $0x150] ss:$8 sps:$4 sm:$0xff]  }
 0x205   :  { %v557_v49 = vpop.f32.mrb[8].mxu0  ;;  %v741_v50 = vmax.f32 %v713_v47, %v714_v48  ;;  %v2557_v48 = vld [vmem:[#allocation8 + $0x164] ss:$8 sps:$4 sm:$0xff]  }
 0x206   :  { %v559_v51 = vpop.f32.mrb[9].mxu0 }
 0x207   :  { %v680_v53 = vmax.f32 %v557_v49, %v559_v51  ;;  %v561_v54 = vpop.f32.mrb[10].mxu0  ;;  %v742_v55 = vmax.f32 %v741_v50, 0.0 }
 0x208   :  { %v563_v13 = vpop.f32.mrb[11].mxu0 }
 0x209   :  { %v681_v56 = vmax.f32 %v561_v54, %v563_v13  ;;  %v767_v57 = vpack.c.bf16 %v742_v55, %v740_v52  ;;  %v715_v58 = vadd.f32 %v3207_v3, %v680_v53  ;;  %v2612_v52 = vld [vmem:[#allocation11 + $0x8] sm:$0xff]   ;;  %v2613_v54 = vld [vmem:[#allocation11 + $0x50] sm:$0xff]  }
 0x20a   :  { %v2555_v13 = vld [vmem:[#allocation8 + $0x160] ss:$8 sps:$4 sm:$0xff]   ;;  %2301 = vmatpush3.bf16.msra.mxu0 %v2612_v52 }
 0x20b   :  { %v716_v59 = vadd.f32 %v3207_v3, %v681_v56  ;;  %2302 = vmatprep.subr.bf16.mxu0 %v2613_v54 }
 0x20d   :  { %v567_v60 = vpop.f32.mrb[12].mxu0  ;;  %v743_v61 = vmax.f32 %v715_v58, %v716_v59 }
 0x20e   :  { %v569_v62 = vpop.f32.mrb[13].mxu0 }
 0x20f   :  { %v682_v63 = vmax.f32 %v567_v60, %v569_v62  ;;  %v571_v0 = vpop.f32.mrb[14].mxu0  ;;  %v744_v1 = vmax.f32 %v743_v61, 0.0  ;;  %v2614_v60 = vld [vmem:[#allocation11 + $0x10] sm:$0xff]   ;;  %v2615_v61 = vld [vmem:[#allocation11 + $0x58] sm:$0xff]  }
 0x210   :  { %v573_v26 = vpop.f32.mrb[15].mxu0  ;;  %2303 = vmatpush3.bf16.msra.mxu0 %v2614_v60 }
 0x211   :  { %v683_v4 = vmax.f32 %v571_v0, %v573_v26  ;;  %v768_v5 = vpack.c.bf16 %v744_v1, %v742_v55  ;;  %v717_v8 = vadd.f32 %v3207_v3, %v682_v63  ;;  %v2558_v0 = vld [vmem:[#allocation8 + $0x170] ss:$8 sps:$4 sm:$0xff]   ;;  %v2563_v26 = vld [vmem:[#allocation8 + $0x184] ss:$8 sps:$4 sm:$0xff]   ;;  %2304 = vmatprep.subr.bf16.mxu0 %v2615_v61 }
 0x213   :  { %v718_v9 = vadd.f32 %v3207_v3, %v683_v4  ;;  %1292 = vmatprep.mubr.bf16.mxu1 %v768_v5 }
 0x214   :  { %1293 = vmatmul.mubr.bf16.vlgmr.msra.gmra.mrb[0].mxu1 %v767_v57  ;;  %v2560_v57 = vld [vmem:[#allocation8 + $0x174] ss:$8 sps:$4 sm:$0xff]  }
 0x215   :  { %v745_v10 = vmax.f32 %v717_v8, %v718_v9  ;;  %v577_v15 = vpop.f32.mrb[16].mxu0  ;;  %1344 = vmatpush1.bf16.msra.mxu1 %v2537_v6  ;;  %v2617_v9 = vld [vmem:[#allocation11 + $0x60] sm:$0xff]  }
 0x216   :  { %v579_v28 = vpop.f32.mrb[17].mxu0  ;;  %1345 = vmatprep.subr.bf16.mxu1 %v2542_v7  ;;  %v2616_v7 = vld [vmem:[#allocation11 + $0x18] sm:$0xff]  }
 0x217   :  { %v746_v12 = vmax.f32 %v745_v10, 0.0  ;;  %v684_v14 = vmax.f32 %v577_v15, %v579_v28  ;;  %v581_v16 = vpop.f32.mrb[18].mxu0  ;;  %v2566_v28 = vld [vmem:[#allocation8 + $0x194] ss:$8 sps:$4 sm:$0xff]   ;;  %2305 = vmatpush3.bf16.msra.mxu0 %v2616_v7 }
 0x218   :  { %v583_v37 = vpop.f32.mrb[19].mxu0  ;;  %2306 = vmatprep.subr.bf16.mxu0 %v2617_v9 }
 0x219   :  { %v685_v17 = vmax.f32 %v581_v16, %v583_v37  ;;  %1346 = vmatpush1.bf16.msra.mxu1 %v2540_v11  ;;  %v3217_v19 = vpack.c.bf16 %v746_v12, %v744_v1  ;;  %v719_v42 = vadd.f32 %v3207_v3, %v684_v14  ;;  %v2561_v11 = vld [vmem:[#allocation8 + $0x180] ss:$8 sps:$4 sm:$0xff]  }
 0x21a   :  { %1347 = vmatprep.subr.bf16.mxu1 %v2545_v2  ;;  %v2618_v14 = vld [vmem:[#allocation11 + $0x20] sm:$0xff]   ;;  %v2619_v16 = vld [vmem:[#allocation11 + $0x68] sm:$0xff]  }
 0x21b   :  { %v720_v21 = vadd.f32 %v3207_v3, %v685_v17  ;;  %2307 = vmatpush3.bf16.msra.mxu0 %v2618_v14 }
 0x21c   :  { %2308 = vmatprep.subr.bf16.mxu0 %v2619_v16 }
 0x21d   :  { %v747_v22 = vmax.f32 %v719_v42, %v720_v21  ;;  %v587_v23 = vpop.f32.mrb[20].mxu0  ;;  %1348 = vmatpush1.bf16.msra.mxu1 %v2543_v18  ;;  %v2564_v18 = vld [vmem:[#allocation8 + $0x190] ss:$8 sps:$4 sm:$0xff]   ;;  %v2569_v42 = vld [vmem:[#allocation8 + $0x1a4] ss:$8 sps:$4 sm:$0xff]  }
 0x21e   :  { %v589_v25 = vpop.f32.mrb[21].mxu0  ;;  %1349 = vmatprep.subr.bf16.mxu1 %v2548_v20 }
 0x21f   :  { %v748_v29 = vmax.f32 %v747_v22, 0.0  ;;  %v686_v30 = vmax.f32 %v587_v23, %v589_v25  ;;  %v591_v31 = vpop.f32.mrb[22].mxu0 }
 0x220   :  { %v593_v32 = vpop.f32.mrb[23].mxu0 }
 0x221   :  { %v687_v33 = vmax.f32 %v591_v31, %v593_v32  ;;  %v3221_v34 = vpack.c.bf16 %v748_v29, %v746_v12  ;;  %1350 = vmatpush1.bf16.msra.mxu1 %v2546_v24  ;;  %v721_v38 = vadd.f32 %v3207_v3, %v686_v30  ;;  %v2620_v24 = vld [vmem:[#allocation11 + $0x28] sm:$0xff]   ;;  %v2572_v32 = vld [vmem:[#allocation8 + $0x1b4] ss:$8 sps:$4 sm:$0xff]  }
 0x222   :  { %1351 = vmatprep.subr.bf16.mxu1 %v2551_v27  ;;  %v2621_v27 = vld [vmem:[#allocation11 + $0x70] sm:$0xff]   ;;  %v2567_v30 = vld [vmem:[#allocation8 + $0x1a0] ss:$8 sps:$4 sm:$0xff]   ;;  %2309 = vmatpush3.bf16.msra.mxu0 %v2620_v24 }
 0x223   :  { %v722_v39 = vadd.f32 %v3207_v3, %v687_v33  ;;  %1302 = vmatprep.mubr.bf16.mxu1 %v3221_v34  ;;  %2310 = vmatprep.subr.bf16.mxu0 %v2621_v27 }
 0x224   :  { %1303 = vmatmul.mubr.bf16.gmra.mrb[4].mxu1 %v3217_v19 }
 0x225   :  { %v749_v44 = vmax.f32 %v721_v38, %v722_v39  ;;  %v597_v45 = vpop.f32.mrb[24].mxu0  ;;  %1352 = vmatpush1.bf16.msra.mxu1 %v2549_v35 }
 0x226   :  { %v599_v47 = vpop.f32.mrb[25].mxu0  ;;  %1353 = vmatprep.subr.bf16.mxu1 %v2554_v36  ;;  %v2622_v36 = vld [vmem:[#allocation11 + $0x30] sm:$0xff]  }
 0x227   :  { %v750_v49 = vmax.f32 %v749_v44, 0.0  ;;  %v688_v50 = vmax.f32 %v597_v45, %v599_v47  ;;  %v601_v51 = vpop.f32.mrb[26].mxu0  ;;  %2311 = vmatpush3.bf16.msra.mxu0 %v2622_v36 }
 0x228   :  { %v603_v53 = vpop.f32.mrb[27].mxu0 }
 0x229   :  { %v689_v55 = vmax.f32 %v601_v51, %v603_v53  ;;  %1354 = vmatpush1.bf16.msra.mxu1 %v2552_v46  ;;  %v3227_v56 = vpack.c.bf16 %v750_v49, %v748_v29  ;;  %v723_v58 = vadd.f32 %v3207_v3, %v688_v50  ;;  %v2573_v50 = vld [vmem:[#allocation8 + $0x1c0] ss:$8 sps:$4 sm:$0xff]   ;;  %v2578_v51 = vld [vmem:[#allocation8 + $0x1d4] ss:$8 sps:$4 sm:$0xff]  }
 0x22a   :  { %1355 = vmatprep.subr.bf16.mxu1 %v2557_v48 }
 0x22b   :  { %v724_v59 = vadd.f32 %v3207_v3, %v689_v55 }
 0x22d   :  { %v751_v62 = vmax.f32 %v723_v58, %v724_v59  ;;  %v607_v63 = vpop.f32.mrb[28].mxu0  ;;  %1356 = vmatpush1.bf16.msra.mxu1 %v2555_v13  ;;  %v2576_v13 = vld [vmem:[#allocation8 + $0x1d0] ss:$8 sps:$4 sm:$0xff]   ;;  %v2581_v58 = vld [vmem:[#allocation8 + $0x1e4] ss:$8 sps:$4 sm:$0xff]  }
 0x22e   :  { %v609_v1 = vpop.f32.mrb[29].mxu0  ;;  %1357 = vmatprep.subr.bf16.mxu1 %v2560_v57 }
 0x22f   :  { %v752_v4 = vmax.f32 %v751_v62, 0.0  ;;  %v690_v5 = vmax.f32 %v607_v63, %v609_v1  ;;  %v611_v6 = vpop.f32.mrb[30].mxu0 }
 0x230   :  { %v613_v8 = vpop.f32.mrb[31].mxu0 }
 0x231   :  { %v691_v10 = vmax.f32 %v611_v6, %v613_v8  ;;  %v3231_v15 = vpack.c.bf16 %v752_v4, %v750_v49  ;;  %1358 = vmatpush1.bf16.msra.mxu1 %v2558_v0  ;;  %v725_v2 = vadd.f32 %v3207_v3, %v690_v5  ;;  %v2579_v0 = vld [vmem:[#allocation8 + $0x1e0] ss:$8 sps:$4 sm:$0xff]   ;;  %v2582_v8 = vld [vmem:[#allocation8 + $0x1f0] ss:$8 sps:$4 sm:$0xff]  }
 0x232   :  { %1359 = vmatprep.subr.bf16.mxu1 %v2563_v26  ;;  %v2584_v26 = vld [vmem:[#allocation8 + $0x1f4] ss:$8 sps:$4 sm:$0xff]  }
 0x233   :  { %v726_v12 = vadd.f32 %v3207_v3, %v691_v10  ;;  %1312 = vmatprep.mubr.bf16.mxu1 %v3231_v15  ;;  %v2587_v10 = vld [vmem:[#allocation8 + $0x204] ss:$8 sps:$4 sm:$0xff]  }
 0x234   :  { %1313 = vmatmul.mubr.bf16.gmra.mrb[8].mxu1 %v3227_v56 }
 0x235   :  { %v753_v37 = vmax.f32 %v725_v2, %v726_v12  ;;  %v617_v17 = vpop.f32.mrb[32].mxu0  ;;  %1360 = vmatpush1.bf16.msra.mxu1 %v2561_v11 }
 0x236   :  { %v619_v20 = vpop.f32.mrb[33].mxu0  ;;  %1361 = vmatprep.subr.bf16.mxu1 %v2566_v28 }
 0x237   :  { %v754_v21 = vmax.f32 %v753_v37, 0.0  ;;  %v692_v22 = vmax.f32 %v617_v17, %v619_v20  ;;  %v621_v23 = vpop.f32.mrb[34].mxu0 }
 0x238   :  { %v623_v25 = vpop.f32.mrb[35].mxu0 }
 0x239   :  { %v693_v29 = vmax.f32 %v621_v23, %v623_v25  ;;  %1362 = vmatpush1.bf16.msra.mxu1 %v2564_v18  ;;  %v3237_v31 = vpack.c.bf16 %v754_v21, %v752_v4  ;;  %v727_v33 = vadd.f32 %v3207_v3, %v692_v22 }
 0x23a   :  { %1363 = vmatprep.subr.bf16.mxu1 %v2569_v42 }
 0x23b   :  { %v728_v35 = vadd.f32 %v3207_v3, %v693_v29  ;;  %v2585_v29 = vld [vmem:[#allocation8 + $0x200] ss:$8 sps:$4 sm:$0xff]  }
 0x23d   :  { %v755_v38 = vmax.f32 %v727_v33, %v728_v35  ;;  %v627_v39 = vpop.f32.mrb[36].mxu0  ;;  %1364 = vmatpush1.bf16.msra.mxu1 %v2567_v30 }
 0x23e   :  { %v629_v41 = vpop.f32.mrb[37].mxu0  ;;  %1365 = vmatprep.subr.bf16.mxu1 %v2572_v32  ;;  %v2590_v32 = vld [vmem:[#allocation8 + $0x214] ss:$8 sps:$4 sm:$0xff]  }
 0x23f   :  { %v756_v44 = vmax.f32 %v755_v38, 0.0  ;;  %v694_v45 = vmax.f32 %v627_v39, %v629_v41  ;;  %v631_v46 = vpop.f32.mrb[38].mxu0  ;;  %v2593_v38 = vld [vmem:[#allocation8 + $0x224] ss:$8 sps:$4 sm:$0xff]  }
 0x240   :  { %v633_v47 = vpop.f32.mrb[39].mxu0 }
 0x241   :  { %v695_v48 = vmax.f32 %v631_v46, %v633_v47  ;;  %v3241_v49 = vpack.c.bf16 %v756_v44, %v754_v21  ;;  %1366 = vmatpush1.bf16.msra.mxu1 %v2570_v40  ;;  %v729_v52 = vadd.f32 %v3207_v3, %v694_v45  ;;  %v2591_v45 = vld [vmem:[#allocation8 + $0x220] ss:$8 sps:$4 sm:$0xff]  }
 0x242   :  { %1367 = vmatprep.subr.bf16.mxu1 %v2575_v43 }
 0x243   :  { %v730_v53 = vadd.f32 %v3207_v3, %v695_v48  ;;  %1322 = vmatprep.mubr.bf16.mxu1 %v3241_v49 }
 0x244   :  { %1323 = vmatmul.mubr.bf16.gmra.mrb[12].mxu1 %v3237_v31 }
 0x245   :  { %v757_v54 = vmax.f32 %v729_v52, %v730_v53  ;;  %v637_v55 = vpop.f32.mrb[40].mxu0  ;;  %1368 = vmatpush1.bf16.msra.mxu1 %v2573_v50  ;;  %v2599_v52 = vld [vmem:[#allocation8 + $0x244] ss:$8 sps:$4 sm:$0xff]  }
 0x246   :  { %v639_v57 = vpop.f32.mrb[41].mxu0  ;;  %1369 = vmatprep.subr.bf16.mxu1 %v2578_v51 }
 0x247   :  { %v758_v59 = vmax.f32 %v757_v54, 0.0  ;;  %v696_v60 = vmax.f32 %v637_v55, %v639_v57  ;;  %v641_v61 = vpop.f32.mrb[42].mxu0  ;;  %v2597_v54 = vld [vmem:[#allocation8 + $0x240] ss:$8 sps:$4 sm:$0xff]   ;;  %v2605_v57 = vld [vmem:[#allocation8 + $0x264] ss:$8 sps:$4 sm:$0xff]  }
 0x248   :  { %v643_v62 = vpop.f32.mrb[43].mxu0 }
 0x249   :  { %v697_v63 = vmax.f32 %v641_v61, %v643_v62  ;;  %1370 = vmatpush1.bf16.msra.mxu1 %v2576_v13  ;;  %v3247_v1 = vpack.c.bf16 %v758_v59, %v756_v44  ;;  %v731_v4 = vadd.f32 %v3207_v3, %v696_v60  ;;  %v2602_v13 = vld [vmem:[#allocation8 + $0x254] ss:$8 sps:$4 sm:$0xff]   ;;  %v2904_v60 = vmov 0  }
 0x24a   :  { %1371 = vmatprep.subr.bf16.mxu1 %v2581_v58  ;;  %v2608_v58 = vld [vmem:[#allocation8 + $0x274] ss:$8 sps:$4 sm:$0xff]  }
 0x24b   :  { %v732_v5 = vadd.f32 %v3207_v3, %v697_v63  ;;  %v2623_v61 = vld [vmem:[#allocation11 + $0x78] sm:$0xff]   ;;  %v2625_v63 = vld [vmem:[#allocation11 + $0x100] sm:$0xff]  }
 0x24c   :  { %v2624_v62 = vld [vmem:[#allocation11 + $0x38] sm:$0xff]   ;;  %2312 = vmatprep.subr.bf16.mxu0 %v2623_v61 }
 0x24d   :  { %v759_v6 = vmax.f32 %v731_v4, %v732_v5  ;;  %v647_v7 = vpop.f32.mrb[44].mxu0  ;;  %1372 = vmatpush1.bf16.msra.mxu1 %v2579_v0  ;;  %v2905_v0 = vmov 0.0   ;;  %2313 = vmatpush3.bf16.msra.mxu0 %v2624_v62  ;;  %v2635_v4 = vld [vmem:[#allocation11 + $0x120] sm:$0xff]   ;;  %v2638_v5 = vld [vmem:[#allocation11 + $0x128] sm:$0xff]  }
 0x24e   :  { %v649_v9 = vpop.f32.mrb[45].mxu0  ;;  %1373 = vmatprep.subr.bf16.mxu1 %v2584_v26  ;;  %v2632_v26 = vld [vmem:[#allocation11 + $0x118] sm:$0xff]  }
 0x24f   :  { %v760_v11 = vmax.f32 %v759_v6, 0.0  ;;  %v698_v28 = vmax.f32 %v647_v7, %v649_v9  ;;  %v651_v2 = vpop.f32.mrb[46].mxu0  ;;  %v2641_v6 = vld [vmem:[#allocation11 + $0x130] sm:$0xff]   ;;  %v2644_v7 = vld [vmem:[#allocation11 + $0x138] sm:$0xff]  }
 0x250   :  { %v653_v12 = vpop.f32.mrb[47].mxu0 }
 0x251   :  { %v699_v14 = vmax.f32 %v651_v2, %v653_v12  ;;  %v776_v16 = vpack.c.bf16 %v760_v11, %v758_v59  ;;  %1374 = vmatpush1.bf16.msra.mxu1 %v2582_v8  ;;  %v733_v37 = vadd.f32 %v3207_v3, %v698_v28  ;;  %v2606_v59 = vld [vmem:[#allocation8 + $0x270] ss:$8 sps:$4 sm:$0xff]   ;;  %v3278_v28 = vld [vmem:[#allocation10] ss:$0 sm:$0xff] }
 0x252   :  { %1426 = vmatprep.subr.bf16.mxu1 %v2587_v10 }
 0x253   :  { %v734_v17 = vadd.f32 %v3207_v3, %v699_v14  ;;  %1332 = vmatprep.mubr.bf16.mxu1 %v776_v16 }
 0x254   :  { %1333 = vmatmul.mubr.bf16.gmra.mrb[16].mxu1 %v3247_v1 }
 0x255   :  { %v761_v18 = vmax.f32 %v733_v37, %v734_v17  ;;  %v657_v20 = vpop.f32.mrb[48].mxu0  ;;  %1375 = vmatprep.mubr.bf16.mxu1 %v3221_v34  ;;  %v2588_v34 = vld [vmem:[#allocation8 + $0x210] ss:$8 sps:$4 sm:$0xff]  }
 0x256   :  { %v659_v42 = vpop.f32.mrb[49].mxu0 }
 0x257   :  { %v762_v21 = vmax.f32 %v761_v18, 0.0  ;;  %v700_v22 = vmax.f32 %v657_v20, %v659_v42  ;;  %v661_v23 = vpop.f32.mrb[50].mxu0 }
 0x258   :  { %v663_v24 = vpop.f32.mrb[51].mxu0 }
 0x259   :  { %v735_v25 = vadd.f32 %v3207_v3, %v700_v22  ;;  %v701_v27 = vmax.f32 %v661_v23, %v663_v24  ;;  %v777_v30 = vpack.c.bf16 %v762_v21, %v760_v11 }
 0x25b   :  { %v736_v33 = vadd.f32 %v3207_v3, %v701_v27 }
 0x25c   :  { %1376 = vmatmul.mubr.bf16.vlgmr.msra.gmra.mrb[0].mxu1 %v3217_v19  ;;  %v2596_v19 = vld [vmem:[#allocation8 + $0x234] ss:$8 sps:$4 sm:$0xff]  }
 0x25d   :  { %v763_v35 = vmax.f32 %v735_v25, %v736_v33  ;;  %1427 = vmatpush1.bf16.msra.mxu1 %v2585_v29  ;;  %1385 = vmatprep.mubr.bf16.mxu1 %v3231_v15  ;;  %v667_v36 = vpop.f32.mrb[52].mxu0  ;;  %v2594_v15 = vld [vmem:[#allocation8 + $0x230] ss:$8 sps:$4 sm:$0xff]  }
 0x25e   :  { %1428 = vmatprep.subr.bf16.mxu1 %v2590_v32  ;;  %v669_v39 = vpop.f32.mrb[53].mxu0 }
 0x25f   :  { %v764_v40 = vmax.f32 %v763_v35, 0.0  ;;  %v702_v41 = vmax.f32 %v667_v36, %v669_v39  ;;  %v671_v43 = vpop.f32.mrb[54].mxu0  ;;  %v2628_v39 = vld [vmem:[#allocation11 + $0x80] sm:$0xff]  }
 0x260   :  { %v673_v44 = vpop.f32.mrb[55].mxu0 }
 0x261   :  { %1429 = vmatpush1.bf16.msra.mxu1 %v2588_v34  ;;  %v737_v46 = vadd.f32 %v3207_v3, %v702_v41  ;;  %v703_v47 = vmax.f32 %v671_v43, %v673_v44  ;;  %v778_v48 = vpack.c.bf16 %v764_v40, %v762_v21  ;;  %v2630_v41 = vld [vmem:[#allocation11 + $0xc8] sm:$0xff]  }
 0x262   :  { %1430 = vmatprep.subr.bf16.mxu1 %v2593_v38 }
 0x263   :  { %v738_v50 = vadd.f32 %v3207_v3, %v703_v47  ;;  %v2600_v3 = vld [vmem:[#allocation8 + $0x250] ss:$8 sps:$4 sm:$0xff]  }
 0x264   :  { %1386 = vmatmul.mubr.bf16.gmra.mrb[4].mxu1 %v3227_v56  ;;  %v2631_v47 = vld [vmem:[#allocation11 + $0x88] sm:$0xff]  }
 0x265   :  { %1395 = vmatprep.mubr.bf16.mxu1 %v3241_v49  ;;  %1431 = vmatpush1.bf16.msra.mxu1 %v2591_v45  ;;  %v765_v51 = vmax.f32 %v737_v46, %v738_v50  ;;  %v2603_v49 = vld [vmem:[#allocation8 + $0x260] ss:$8 sps:$4 sm:$0xff]  }
 0x266   :  { %1432 = vmatprep.subr.bf16.mxu1 %v2596_v19  ;;  %v2633_v19 = vld [vmem:[#allocation11 + $0xd0] sm:$0xff]  }
 0x267   :  { %v766_v53 = vmax.f32 %v765_v51, 0.0 }
 0x269   :  { %1433 = vmatpush1.bf16.msra.mxu1 %v2594_v15  ;;  %v779_v55 = vpack.c.bf16 %v766_v53, %v764_v40  ;;  %v2634_v53 = vld [vmem:[#allocation11 + $0x90] sm:$0xff]  }
 0x26a   :  { %1434 = vmatprep.subr.bf16.mxu1 %v2599_v52 }
 0x26c   :  { %1396 = vmatmul.mubr.bf16.gmra.mrb[8].mxu1 %v3237_v31 }
 0x26d   :  { %1405 = vmatprep.mubr.bf16.mxu1 %v776_v16  ;;  %1435 = vmatpush1.bf16.msra.mxu1 %v2597_v54  ;;  %v2636_v54 = vld [vmem:[#allocation11 + $0xd8] sm:$0xff]  }
 0x26e   :  { %1436 = vmatprep.subr.bf16.mxu1 %v2602_v13 }
 0x271   :  { %1437 = vmatpush1.bf16.msra.mxu1 %v2600_v3 }
 0x272   :  { %1438 = vmatprep.subr.bf16.mxu1 %v2605_v57 }
 0x274   :  { %1406 = vmatmul.mubr.bf16.gmra.mrb[12].mxu1 %v3247_v1 }
 0x275   :  { %1415 = vmatprep.mubr.bf16.mxu1 %v778_v48  ;;  %1439 = vmatpush1.bf16.msra.mxu1 %v2603_v49  ;;  %v2637_v49 = vld [vmem:[#allocation11 + $0x98] sm:$0xff]  }
 0x276   :  { %1440 = vmatprep.subr.bf16.mxu1 %v2608_v58 }
 0x279   :  { %1441 = vmatpush1.bf16.msra.mxu1 %v2606_v59  ;;  %v2639_v59 = vld [vmem:[#allocation11 + $0xe0] sm:$0xff]  }
 0x27a   :  { %2360 = vmatprep.subr.bf16.mxu1 %v2905_v0 }
 0x27c   :  { %1416 = vmatmul.mubr.bf16.gmra.mrb[16].mxu1 %v777_v30 }
 0x27d   :  { %1458 = vmatprep.mubr.bf16.mxu1 %v2904_v60 }
 0x284   :  { %1459 = vmatmul.mubr.bf16.vlgmr.msra.gmra.mrb[0].mxu1 %v3227_v56  ;;  %v2626_v56 = vld [vmem:[#allocation11 + $0x108] sm:$0xff]  }
 0x285   :  { %1468 = vmatprep.mubr.bf16.mxu1 %v2904_v60  ;;  %2361 = vmatpush3.bf16.msra.mxu1 %v2625_v63 }
 0x286   :  { %2362 = vmatprep.subr.bf16.mxu1 %v2905_v0 }
 0x289   :  { %2363 = vmatpush3.bf16.msra.mxu1 %v2626_v56 }
 0x28a   :  { %2364 = vmatprep.subr.bf16.mxu1 %v2905_v0 }
 0x28c   :  { %1469 = vmatmul.mubr.bf16.gmra.mrb[4].mxu1 %v3237_v31  ;;  %v2627_v31 = vld [vmem:[#allocation11 + $0xc0] sm:$0xff]  }
 0x28d   :  { %1478 = vmatprep.mubr.bf16.mxu1 %v2904_v60  ;;  %2320 = vmatprep.subr.bf16.mxu0 %v2627_v31 }
 0x294   :  { %1479 = vmatmul.mubr.bf16.gmra.mrb[8].mxu1 %v3247_v1  ;;  %v2629_v1 = vld [vmem:[#allocation11 + $0x110] sm:$0xff]  }
 0x295   :  { %1488 = vmatprep.mubr.bf16.mxu1 %v2904_v60  ;;  %2365 = vmatpush3.bf16.msra.mxu1 %v2629_v1  ;;  %v2640_v1 = vld [vmem:[#allocation11 + $0xa0] sm:$0xff]  }
 0x296   :  { %2366 = vmatprep.subr.bf16.mxu1 %v2905_v0 }
 0x299   :  { %2367 = vmatpush3.bf16.msra.mxu1 %v2632_v26  ;;  %v2642_v26 = vld [vmem:[#allocation11 + $0xe8] sm:$0xff]  }
 0x29a   :  { %2368 = vmatprep.subr.bf16.mxu1 %v2905_v0 }
 0x29c   :  { %1489 = vmatmul.mubr.bf16.gmra.mrb[12].mxu1 %v777_v30 }
 0x29d   :  { %1498 = vmatprep.mubr.bf16.mxu1 %v2904_v60  ;;  %2369 = vmatpush3.bf16.msra.mxu1 %v2635_v4 }
 0x29e   :  { %2370 = vmatprep.subr.bf16.mxu1 %v2905_v0 }
 0x2a1   :  { %2371 = vmatpush3.bf16.msra.mxu1 %v2638_v5 }
 0x2a2   :  { %2372 = vmatprep.subr.bf16.mxu1 %v2905_v0 }
 0x2a4   :  { %1499 = vmatmul.mubr.bf16.gmra.mrb[16].mxu1 %v779_v55 }
 0x2a5   :  { %2373 = vmatpush3.bf16.msra.mxu1 %v2641_v6  ;;  %2376 = vmatprep.mubr.msk.bf16.mxu1 %vm2906_vm4, %v2905_v0 }
 0x2a6   :  { %2374 = vmatprep.subr.bf16.mxu1 %v2905_v0 }
 0x2a9   :  { %2375 = vmatpush3.bf16.msra.mxu1 %v2644_v7  ;;  %v2643_v7 = vld [vmem:[#allocation11 + $0xa8] sm:$0xff]  }
 0x357   :  { %v1460_v8 = vpop.f32.mrb[0].mxu1 }
 0x358   :  { %v1462_v9 = vpop.f32.mrb[1].mxu1 }
 0x359   :  { %v1509_v10 = vmax.f32 %v1460_v8, %v1462_v9  ;;  %v1464_v11 = vpop.f32.mrb[2].mxu1  ;;  %v2645_v8 = vld [vmem:[#allocation11 + $0xf0] sm:$0xff]  }
 0x35a   :  { %v1466_v2 = vpop.f32.mrb[3].mxu1 }
 0x35b   :  { %v1510_v12 = vmax.f32 %v1464_v11, %v1466_v2  ;;  %v1526_v14 = vadd.f32 %v3278_v28, %v1509_v10  ;;  %v2646_v11 = vld [vmem:[#allocation11 + $0xb0] sm:$0xff]   ;;  %v2647_v2 = vld [vmem:[#allocation11 + $0xf8] sm:$0xff]  }
 0x35d   :  { %v1527_v16 = vadd.f32 %v3278_v28, %v1510_v12  ;;  %v2648_v12 = vld [vmem:[#allocation11 + $0xb8] sm:$0xff]  }
 0x35f   :  { %v1536_v37 = vmax.f32 %v1526_v14, %v1527_v16  ;;  %v1470_v17 = vpop.f32.mrb[4].mxu1 }
 0x360   :  { %v1472_v18 = vpop.f32.mrb[5].mxu1 }
 0x361   :  { %v1511_v20 = vmax.f32 %v1470_v17, %v1472_v18  ;;  %v1474_v42 = vpop.f32.mrb[6].mxu1  ;;  %v1537_v29 = vmax.f32 %v1536_v37, 0.0  ;;  %v2650_v37 = vld [vmem:[#allocation14 + $0x8] sm:$0xff]   ;;  %v2651_v17 = vld [vmem:[#allocation14 + $0x10] sm:$0xff]   ;;  %v2652_v18 = vld [vmem:[#allocation14 + $0x18] sm:$0xff]  }
 0x362   :  { %v1476_v21 = vpop.f32.mrb[7].mxu1 }
 0x363   :  { %v1512_v22 = vmax.f32 %v1474_v42, %v1476_v21  ;;  %v1528_v23 = vadd.f32 %v3278_v28, %v1511_v20  ;;  %v1546_v40 = vpack.c.bf16 %v1537_v29, %v1537_v29  ;;  %v2653_v20 = vld [vmem:[#allocation14 + $0x20] sm:$0xff]   ;;  %v2654_v42 = vld [vmem:[#allocation14 + $0x28] sm:$0xff]   ;;  %v2655_v21 = vld [vmem:[#allocation14 + $0x30] sm:$0xff]  }
 0x365   :  { %v1529_v24 = vadd.f32 %v3278_v28, %v1512_v22  ;;  %v2656_v22 = vld [vmem:[#allocation14 + $0x38] sm:$0xff]  }
 0x367   :  { %v1538_v25 = vmax.f32 %v1528_v23, %v1529_v24  ;;  %v1480_v27 = vpop.f32.mrb[8].mxu1 }
 0x368   :  { %v1482_v30 = vpop.f32.mrb[9].mxu1 }
 0x369   :  { %v1513_v32 = vmax.f32 %v1480_v27, %v1482_v30  ;;  %v1484_v33 = vpop.f32.mrb[10].mxu1  ;;  %v1539_v35 = vmax.f32 %v1538_v25, 0.0 }
 0x36a   :  { %v1486_v34 = vpop.f32.mrb[11].mxu1 }
 0x36b   :  { %v1514_v36 = vmax.f32 %v1484_v33, %v1486_v34  ;;  %v1547_v38 = vpack.c.bf16 %v1539_v35, %v1539_v35  ;;  %v1530_v43 = vadd.f32 %v3278_v28, %v1513_v32  ;;  %v2248_v34 = vld [vmem:[#allocation13] ss:$0 sm:$0xff] }
 0x36d   :  { %v1531_v44 = vadd.f32 %v3278_v28, %v1514_v36  ;;  %1910 = vmatprep.mubr.bf16.mxu0 %v1547_v38 }
 0x36e   :  { %1911 = vmatmul.mubr.bf16.vlgmr.msra.gmra.mrb[56].mxu0 %v1546_v40 }
 0x36f   :  { %v1540_v45 = vmax.f32 %v1530_v43, %v1531_v44  ;;  %2321 = vmatpush3.bf16.msra.mxu0 %v2628_v39  ;;  %v1490_v46 = vpop.f32.mrb[12].mxu1 }
 0x370   :  { %v1492_v48 = vpop.f32.mrb[13].mxu1  ;;  %2322 = vmatprep.subr.bf16.mxu0 %v2630_v41 }
 0x371   :  { %v1515_v50 = vmax.f32 %v1490_v46, %v1492_v48  ;;  %v1494_v15 = vpop.f32.mrb[14].mxu1  ;;  %v1541_v14 = vmax.f32 %v1540_v45, 0.0 }
 0x372   :  { %v1496_v51 = vpop.f32.mrb[15].mxu1 }
 0x373   :  { %v1516_v52 = vmax.f32 %v1494_v15, %v1496_v51  ;;  %2323 = vmatpush3.bf16.msra.mxu0 %v2631_v47  ;;  %v1532_v55 = vadd.f32 %v3278_v28, %v1515_v50  ;;  %v1548_v16 = vpack.c.bf16 %v1541_v14, %v1541_v14  ;;  %v2289_v47 = vld [vmem:[#allocation16] ss:$0 sm:$0xff] }
 0x374   :  { %2324 = vmatprep.subr.bf16.mxu0 %v2633_v19 }
 0x375   :  { %v1533_v13 = vadd.f32 %v3278_v28, %v1516_v52 }
 0x377   :  { %v1542_v3 = vmax.f32 %v1532_v55, %v1533_v13  ;;  %2325 = vmatpush3.bf16.msra.mxu0 %v2634_v53  ;;  %v1500_v57 = vpop.f32.mrb[16].mxu1 }
 0x378   :  { %v1502_v58 = vpop.f32.mrb[17].mxu1  ;;  %2326 = vmatprep.subr.bf16.mxu0 %v2636_v54 }
 0x379   :  { %v1517_v60 = vmax.f32 %v1500_v57, %v1502_v58  ;;  %v1504_v61 = vpop.f32.mrb[18].mxu1  ;;  %v1543_v62 = vmax.f32 %v1542_v3, 0.0 }
 0x37a   :  { %v1506_v63 = vpop.f32.mrb[19].mxu1 }
 0x37b   :  { %v1518_v56 = vmax.f32 %v1504_v61, %v1506_v63  ;;  %2327 = vmatpush3.bf16.msra.mxu0 %v2637_v49  ;;  %v1549_v31 = vpack.c.bf16 %v1543_v62, %v1543_v62  ;;  %v1534_v4 = vadd.f32 %v3278_v28, %v1517_v60 }
 0x37c   :  { %2328 = vmatprep.subr.bf16.mxu0 %v2639_v59 }
 0x37d   :  { %v1535_v5 = vadd.f32 %v3278_v28, %v1518_v56  ;;  %1950 = vmatprep.mubr.bf16.mxu0 %v1549_v31  ;;  %v2649_v28 = vld [vmem:[#allocation14] sm:$0xff]  }
 0x37f   :  { %v1544_v6 = vmax.f32 %v1534_v4, %v1535_v5  ;;  %2329 = vmatpush3.bf16.msra.mxu0 %v2640_v1 }
 0x380   :  { %2330 = vmatprep.subr.bf16.mxu0 %v2642_v26 }
 0x381   :  { %v1545_v9 = vmax.f32 %v1544_v6, 0.0 }
 0x383   :  { %v1550_v10 = vpack.c.bf16 %v1545_v9, %v1545_v9  ;;  %2331 = vmatpush3.bf16.msra.mxu0 %v2643_v7 }
 0x384   :  { %2332 = vmatprep.subr.bf16.mxu0 %v2645_v8 }
 0x385   :  { %2377 = vmatmul.mubr.bf16.vlgmr.msra.gmra.mrb[20].mxu1 %v1550_v10 }
 0x387   :  { %2333 = vmatpush3.bf16.msra.mxu0 %v2646_v11 }
 0x388   :  { %2334 = vmatprep.subr.bf16.mxu0 %v2647_v2 }
 0x38b   :  { %2335 = vmatpush3.bf16.msra.mxu0 %v2648_v12 }
 0x38c   :  { %2380 = vmatprep.subr.bf16.mxu0 %v2905_v0 }
 0x38e   :  { %1951 = vmatmul.mubr.bf16.vlgmr.msra.gmra.mrb[60].mxu0 %v1548_v16 }
 0x38f   :  { %2396 = vmatprep.mubr.msk.bf16.mxu0 %vm2906_vm4, %v2905_v0  ;;  %2381 = vmatpush3.bf16.msra.mxu0 %v2649_v28 }
 0x390   :  { %2382 = vmatprep.subr.bf16.mxu0 %v2905_v0 }
 0x393   :  { %2383 = vmatpush3.bf16.msra.mxu0 %v2650_v37 }
 0x394   :  { %2384 = vmatprep.subr.bf16.mxu0 %v2905_v0 }
 0x397   :  { %2385 = vmatpush3.bf16.msra.mxu0 %v2651_v17 }
 0x398   :  { %2386 = vmatprep.subr.bf16.mxu0 %v2905_v0 }
 0x39b   :  { %2387 = vmatpush3.bf16.msra.mxu0 %v2652_v18 }
 0x39c   :  { %2388 = vmatprep.subr.bf16.mxu0 %v2905_v0 }
 0x39f   :  { %2389 = vmatpush3.bf16.msra.mxu0 %v2653_v20 }
 0x3a0   :  { %2390 = vmatprep.subr.bf16.mxu0 %v2905_v0 }
 0x3a3   :  { %2391 = vmatpush3.bf16.msra.mxu0 %v2654_v42 }
 0x3a4   :  { %2392 = vmatprep.subr.bf16.mxu0 %v2905_v0 }
 0x3a7   :  { %2393 = vmatpush3.bf16.msra.mxu0 %v2655_v21 }
 0x3a8   :  { %2394 = vmatprep.subr.bf16.mxu0 %v2905_v0 }
 0x3ab   :  { %2395 = vmatpush3.bf16.msra.mxu0 %v2656_v22 }
 0x441   :  { %v2314_v23 = vpop.f32.mrb[56].mxu0 }
 0x442   :  { %v2315_v24 = vpop.f32.mrb[57].mxu0 }
 0x443   :  { %v2316_v25 = vadd.f32 %v2315_v24, %v2314_v23  ;;  %v2317_v27 = vpop.f32.mrb[58].mxu0 }
 0x444   :  { %v2318_v29 = vpop.f32.mrb[59].mxu0 }
 0x445   :  { %v1913_v39 = vadd.f32 %v2316_v25, %v2248_v34 }
 0x458   :  { %v1992_v30 = vpop.f32.mrb[20].mxu1 }
 0x459   :  { %v2378_v32 = vpop.f32.mrb[21].mxu1 }
 0x45a   :  { %v1995_v33 = vpop.f32.mrb[22].mxu1 }
 0x45b   :  { %v2379_v35 = vpop.f32.mrb[23].mxu1 }
 0x461   :  { %v2336_v36 = vpop.f32.mrb[60].mxu0 }
 0x462   :  { %v2337_v38 = vpop.f32.mrb[61].mxu0 }
 0x463   :  { %v2338_v40 = vadd.f32 %v2337_v38, %v2336_v36  ;;  %v2339_v41 = vpop.f32.mrb[62].mxu0 }
 0x464   :  { %v2340_v43 = vpop.f32.mrb[63].mxu0 }
 0x465   :  { %v1953_v44 = vadd.f32 %v2338_v40, %v1913_v39 }
 0x467   :  { %v1993_v0 = vadd.f32 %v1992_v30, %v1953_v44 }
 0x469   :  { %v1998_v45 = vmax.f32 %v1993_v0, 0.0 }
 0x46b   :  { %v1999_v46 = vpack.c.bf16 %v1998_v45, %v1998_v45 }
 0x46d   :  { %2397 = vmatmul.mubr.bf16.vlgmr.msra.gmra.mrb[64].mxu0 %v1999_v46 }
 0x540   :  { %v2105_v48 = vpop.f32.mrb[64].mxu0 }
 0x541   :  { %v2106_v19 = vadd.f32 %v2289_v47, %v2105_v48  ;;  %v2398_v50 = vpop.f32.mrb[65].mxu0 }
 0x542   :  { %v2108_v15 = vpop.f32.mrb[66].mxu0 }
 0x543   :  { %v2111_v51 = vmax.f32 %v2106_v19, 0.0  ;;  %v2399_v52 = vpop.f32.mrb[67].mxu0 }
 0x545   :  { %2112 = vst [vmem:[#allocation17] sm:$0xff] %v2111_v51 }
 0x546   :  { %2866 = shalt.err (!%p2863_p6)
}
 0x547   :  { %s2867_s12 = scalar_lea.hbm %s3321_s9, 128 }
 0x548   :  { %p2868_p7 = scmp.ne.s32.totalorder %s3321_s9, %s2867_s12  ;;  %p2871_p8 = scmp.lt.u32.totalorder %s2867_s12, %s3321_s9 }
 0x54a   :  { %p2873_p9 = pnand %p2871_p8, %p2868_p7 }
 0x54c   :  { %2876 = shalt.err (!%p2873_p9)
}
 0x54d   :  { %2122 = dma.vmem_to_hbm [thread:$0]  %s2120_s19, 128, %s3321_s9, [#allocation4]  }
 0x54e   :  { %2887 = dma.done.wait [#allocation4], 128  }
 0x54f   :  { %2888 = vsyncadd [#allocation4], 4294967168 }
 0x550   :  { %2126 = vsyncpa [#allocation3], 1 }
 0x551   :  { %2127 = vsyncpa [#allocation6], 1 }
 0x552   :  { %2128 = vsyncpa [#allocation9], 1 }
 0x553   :  { %2129 = vsyncpa [#allocation12], 1 }
 0x554   :  { %2130 = vsyncpa [#allocation15], 1 }
 0x555   :  { %2131 = vsyncpa [#allocation4], 1 }

</bundles_post_ra>
